<compile_context>
chip_gen: v5e
topology: v5e:2x2
jax: 0.10.0
libtpu: 0.0.40
codegen_flags: <defaults>
</compile_context>

<pallas_src>
import jax
import jax.numpy as jnp
from jax import lax
from jax.experimental import pallas as pl
from jax.experimental.pallas import tpu as pltpu

C_IN = 896     # conv2d71 in_channels  / conv2d72 out_channels  (7 x 128 lanes)
C_MID = 224    # conv2d71 out_channels / conv2d72 in_channels
C_MID_P = 256  # hidden dim padded to a multiple of 128 (2 x 128 lanes)


def _round_up(x, m):
    return ((x + m - 1) // m) * m


def _se_kernel(x_ref, w1_ref, b1_ref, w2_ref, b2_ref, o_ref):
    # x_ref : [tm, C_IN]        f32   (rows = spatial positions of this tile)
    # w1_ref: [C_MID_P, C_IN]   bf16  (conv1 weight, untransposed, zero-padded rows)
    # b1_ref: [1, C_MID_P]      f32   (zero-padded)
    # w2_ref: [C_IN, C_MID_P]   bf16  (conv2 weight, untransposed, zero-padded cols)
    # b2_ref: [1, C_IN]         f32
    # o_ref : [tm, C_IN]        f32
    x = x_ref[...].astype(jnp.bfloat16)

    # h[m, j] = sum_k x[m, k] * w1[j, k]  (contract dim 1 with dim 1 -> no transpose copy)
    h = lax.dot_general(
        x, w1_ref[...],
        dimension_numbers=(((1,), (1,)), ((), ())),
        preferred_element_type=jnp.float32,
    )
    h = jnp.maximum(h + b1_ref[...], 0.0)            # bias + ReLU (f32)

    # y[m, c] = sum_j h[m, j] * w2[c, j]
    y = lax.dot_general(
        h.astype(jnp.bfloat16), w2_ref[...],
        dimension_numbers=(((1,), (1,)), ((), ())),
        preferred_element_type=jnp.float32,
    )
    o_ref[...] = jax.nn.sigmoid(y + b2_ref[...])     # stable, EUP exp/recip path


def prepare_params(w1, b1, w2, b2):
    """One-time parameter prep (outside the hot path): pad hidden dim 224->256,
    cast weights to bf16, reshape biases to row vectors."""
    w1p = jnp.pad(w1, ((0, C_MID_P - C_MID), (0, 0))).astype(jnp.bfloat16)  # [256, 896]
    b1p = jnp.pad(b1, (0, C_MID_P - C_MID)).reshape(1, C_MID_P)             # [1, 256] f32
    w2p = jnp.pad(w2, ((0, 0), (0, C_MID_P - C_MID))).astype(jnp.bfloat16)  # [896, 256]
    b2p = b2.reshape(1, C_IN)                                               # [1, 896] f32
    return w1p, b1p, w2p, b2p


def se_block(x_nchw, w1p, b1p, w2p, b2p):
    """x_nchw: [N, 896, H, W] float32. Returns [N, 896, H, W] float32."""
    N, C, H, W = x_nchw.shape
    assert C == C_IN

    # NCHW -> [rows, C]. For H=W=1 (the regnet SE path) this is a pure reshape.
    if H == 1 and W == 1:
        x_rows = x_nchw.reshape(N, C)
    else:
        # TODO(synk): for H,W>1 avoid this full extra HBM pass by keeping
        # activations channel-last upstream (or contracting channels with HW
        # on the lane axis inside the kernel).
        x_rows = jnp.transpose(x_nchw, (0, 2, 3, 1)).reshape(N * H * W, C)

    M = x_rows.shape[0]
    # Row tile: sublane-aligned, capped at 512 (per-step DMA far above the
    # ~0.35us step overhead; safe on every chip with the 32 MiB VMEM limit).
    tm = min(512, _round_up(M, 8))
    grid = (pl.cdiv(M, tm),)   # no wrapper pad: Pallas masks the partial block

    out = pl.pallas_call(
        _se_kernel,
        out_shape=jax.ShapeDtypeStruct((M, C_IN), jnp.float32),
        grid=grid,
        in_specs=[
            pl.BlockSpec((tm, C_IN), lambda i: (i, 0)),          # x tile
            pl.BlockSpec((C_MID_P, C_IN), lambda i: (0, 0)),     # w1 (resident)
            pl.BlockSpec((1, C_MID_P), lambda i: (0, 0)),        # b1 (resident)
            pl.BlockSpec((C_IN, C_MID_P), lambda i: (0, 0)),     # w2 (resident)
            pl.BlockSpec((1, C_IN), lambda i: (0, 0)),           # b2 (resident)
        ],
        out_specs=pl.BlockSpec((tm, C_IN), lambda i: (i, 0)),
        compiler_params=pltpu.CompilerParams(
            dimension_semantics=("parallel",),
            vmem_limit_bytes=32 * 1024 * 1024,  # lift v5e's 16 MiB default; <64 MiB for v7x
        ),
    )(x_rows, w1p, b1p, w2p, b2p)

    if H == 1 and W == 1:
        return out.reshape(N, C_IN, 1, 1)
    return jnp.transpose(out.reshape(N, H, W, C_IN), (0, 3, 1, 2))


def _init_params(key):
    # Deterministic, PyTorch-Conv2d-like uniform init (kaiming_uniform-ish bounds).
    k1, k2, k3, k4 = jax.random.split(key, 4)
    bound1 = 1.0 / (C_IN ** 0.5)   # fan_in = 896 * 1 * 1
    bound2 = 1.0 / (C_MID ** 0.5)  # fan_in = 224 * 1 * 1
    w1 = jax.random.uniform(k1, (C_MID, C_IN), jnp.float32, -bound1, bound1)
    b1 = jax.random.uniform(k2, (C_MID,), jnp.float32, -bound1, bound1)
    w2 = jax.random.uniform(k3, (C_IN, C_MID), jnp.float32, -bound2, bound2)
    b2 = jax.random.uniform(k4, (C_IN,), jnp.float32, -bound2, bound2)
    return w1, b1, w2, b2


if __name__ == "__main__":
    key = jax.random.PRNGKey(0)
    kx, kp = jax.random.split(key)

    # Channels are fixed by the module (896); spatial is 1x1 as in the original.
    N, H, W = 2, 1, 1
    x = jax.random.normal(kx, (N, C_IN, H, W), jnp.float32)

    w1, b1, w2, b2 = _init_params(kp)
    params = prepare_params(w1, b1, w2, b2)   # pad/cast/reshape done once

    fn = jax.jit(se_block)
    y = jax.block_until_ready(fn(x, *params))

    # Matched-precision reference (same bf16 rounding of matmul inputs,
    # f32 accumulation) computed in plain JAX.
    x_rows = x.reshape(N, C_IN)
    xb = x_rows.astype(jnp.bfloat16).astype(jnp.float32)
    w1b = w1.astype(jnp.bfloat16).astype(jnp.float32)
    w2b = w2.astype(jnp.bfloat16).astype(jnp.float32)
    h_ref = jnp.maximum(xb @ w1b.T + b1, 0.0)
    hb = h_ref.astype(jnp.bfloat16).astype(jnp.float32)
    y_ref = jax.nn.sigmoid(hb @ w2b.T + b2).reshape(N, C_IN, 1, 1)

    assert y.shape == (N, C_IN, H, W)
    assert bool(jnp.all(jnp.isfinite(y)))
    assert jnp.allclose(y, y_ref, atol=1e-3, rtol=1e-3)

    print("KERNEL_OK")
</pallas_src>

<mosaic_0001>
module attributes {stable_mosaic.version = 11 : i64} {
  func.func @_se_kernel(%arg0: i32, %arg1: memref<8x896xf32, #tpu.memory_space<vmem>>, %arg2: memref<256x896xbf16, #tpu.memory_space<vmem>>, %arg3: memref<1x256xf32, #tpu.memory_space<vmem>>, %arg4: memref<896x256xbf16, #tpu.memory_space<vmem>>, %arg5: memref<1x896xf32, #tpu.memory_space<vmem>>, %arg6: memref<8x896xf32, #tpu.memory_space<vmem>>) attributes {dimension_semantics = [#tpu.dimension_semantics<parallel>], iteration_bounds = array<i64: 1>, scalar_prefetch = 0 : i64, scratch_operands = 0 : i64, tpu.core_type = #tpu.core_type<tc>, window_params = [{transform_indices = @transform_0, window_bounds = array<i64: 8, 896>}, {pipeline_mode = #tpu.pipeline_mode<synchronous>, transform_indices = @transform_1, window_bounds = array<i64: 256, 896>}, {pipeline_mode = #tpu.pipeline_mode<synchronous>, transform_indices = @transform_2, window_bounds = array<i64: 1, 256>}, {pipeline_mode = #tpu.pipeline_mode<synchronous>, transform_indices = @transform_3, window_bounds = array<i64: 896, 256>}, {pipeline_mode = #tpu.pipeline_mode<synchronous>, transform_indices = @transform_4, window_bounds = array<i64: 1, 896>}, {transform_indices = @transform_5, window_bounds = array<i64: 8, 896>}]} {
    %c0 = arith.constant 0 : index
    %c0_0 = arith.constant 0 : index
    %0 = vector.load %arg1[%c0, %c0_0] : memref<8x896xf32, #tpu.memory_space<vmem>>, vector<8x896xf32>
    %1 = arith.truncf %0 : vector<8x896xf32> to vector<8x896xbf16>
    %c0_1 = arith.constant 0 : index
    %c0_2 = arith.constant 0 : index
    %2 = vector.load %arg2[%c0_1, %c0_2] : memref<256x896xbf16, #tpu.memory_space<vmem>>, vector<256x896xbf16>
    %cst = arith.constant dense<0.000000e+00> : vector<8x256xf32>
    %3 = tpu.matmul %1, %2, %cst {dimension_numbers = #tpu.dot_dimension_numbers<[1], [1], [0], [0], [0, 0, 1, 0], [], []>} : vector<8x896xbf16>, vector<256x896xbf16>, vector<8x256xf32> -> vector<8x256xf32>
    %c0_3 = arith.constant 0 : index
    %c0_4 = arith.constant 0 : index
    %4 = vector.load %arg3[%c0_3, %c0_4] : memref<1x256xf32, #tpu.memory_space<vmem>>, vector<1x256xf32>
    %5 = vector.broadcast %4 : vector<1x256xf32> to vector<8x256xf32>
    %6 = arith.addf %3, %5 : vector<8x256xf32>
    %cst_5 = arith.constant 0.000000e+00 : f32
    %7 = vector.broadcast %cst_5 : f32 to vector<8x256xf32>
    %8 = arith.maximumf %6, %7 : vector<8x256xf32>
    %9 = arith.truncf %8 : vector<8x256xf32> to vector<8x256xbf16>
    %c0_6 = arith.constant 0 : index
    %c0_7 = arith.constant 0 : index
    %10 = vector.load %arg4[%c0_6, %c0_7] : memref<896x256xbf16, #tpu.memory_space<vmem>>, vector<896x256xbf16>
    %cst_8 = arith.constant dense<0.000000e+00> : vector<8x896xf32>
    %11 = tpu.matmul %9, %10, %cst_8 {dimension_numbers = #tpu.dot_dimension_numbers<[1], [1], [0], [0], [0, 0, 1, 0], [], []>} : vector<8x256xbf16>, vector<896x256xbf16>, vector<8x896xf32> -> vector<8x896xf32>
    %c0_9 = arith.constant 0 : index
    %c0_10 = arith.constant 0 : index
    %12 = vector.load %arg5[%c0_9, %c0_10] : memref<1x896xf32, #tpu.memory_space<vmem>>, vector<1x896xf32>
    %13 = vector.broadcast %12 : vector<1x896xf32> to vector<8x896xf32>
    %14 = arith.addf %11, %13 : vector<8x896xf32>
    %15 = arith.negf %14 : vector<8x896xf32>
    %16 = math.exp %15 : vector<8x896xf32>
    %cst_11 = arith.constant 1.000000e+00 : f32
    %17 = vector.broadcast %cst_11 : f32 to vector<8x896xf32>
    %18 = arith.addf %17, %16 : vector<8x896xf32>
    %19 = arith.divf %17, %18 : vector<8x896xf32>
    %c0_12 = arith.constant 0 : index
    %c0_13 = arith.constant 0 : index
    %20 = vector.load %arg6[%c0_12, %c0_13] : memref<8x896xf32, #tpu.memory_space<vmem>>, vector<8x896xf32>
    tpu.vector_store %arg6[%c0_12, %c0_13], %19 {strides = array<i32>} : memref<8x896xf32, #tpu.memory_space<vmem>>, vector<8x896xf32>,
    return
  }
  func.func @transform_0(%arg0: i32) -> (i32, i32) {
    %c0_i32 = arith.constant 0 : i32
    %c0_i32_0 = arith.constant 0 : i32
    return %arg0, %c0_i32 : i32, i32
  }
  func.func @transform_1(%arg0: i32) -> (i32, i32) {
    %c0_i32 = arith.constant 0 : i32
    %c0_i32_0 = arith.constant 0 : i32
    %c0_i32_1 = arith.constant 0 : i32
    return %c0_i32, %c0_i32_0 : i32, i32
  }
  func.func @transform_2(%arg0: i32) -> (i32, i32) {
    %c0_i32 = arith.constant 0 : i32
    %c0_i32_0 = arith.constant 0 : i32
    %c0_i32_1 = arith.constant 0 : i32
    return %c0_i32, %c0_i32_0 : i32, i32
  }
  func.func @transform_3(%arg0: i32) -> (i32, i32) {
    %c0_i32 = arith.constant 0 : i32
    %c0_i32_0 = arith.constant 0 : i32
    %c0_i32_1 = arith.constant 0 : i32
    return %c0_i32, %c0_i32_0 : i32, i32
  }
  func.func @transform_4(%arg0: i32) -> (i32, i32) {
    %c0_i32 = arith.constant 0 : i32
    %c0_i32_0 = arith.constant 0 : i32
    %c0_i32_1 = arith.constant 0 : i32
    return %c0_i32, %c0_i32_0 : i32, i32
  }
  func.func @transform_5(%arg0: i32) -> (i32, i32) {
    %c0_i32 = arith.constant 0 : i32
    %c0_i32_0 = arith.constant 0 : i32
    return %arg0, %c0_i32 : i32, i32
  }
}

</mosaic_0001>

<bundles_post_ra>
// kernel: se_block.1
= control target key start
LH: loop header
LB: loop body
LE: loop exit
PB: predicated region body
PF: predicated region fallthrough
CT: control target
= control target key end

     0   :  { %10 = vsyncpa [#allocation3], 0  ;;  %s3501_s0 = inlined_call_operand.vmem [shape: f32[2,896], index: 0, kind: input, shape index: {}]   ;;  %s3502_s1 = inlined_call_operand.hbm [shape: bf16[256,896], index: 1, kind: input, shape index: {}]   ;;  %s3503_s2 = inlined_call_operand.vmem [shape: f32[1,256], index: 2, kind: input, shape index: {}]   ;;  %s3504_s3 = inlined_call_operand.hbm [shape: bf16[896,256], index: 3, kind: input, shape index: {}]   ;;  %s3505_s4 = inlined_call_operand.vmem [shape: f32[1,896], index: 4, kind: input, shape index: {}]   ;;  %s3506_s5 = inlined_call_operand.vmem [shape: f32[2,896], index: 5, kind: output, shape index: {}]  }
   0x1   :  { %s18_s20 = sshll.u32 %s3502_s1, 4  ;;  %s19_s20 = int_to_ptr.hbm [resolvable:$true] %s18_s20 }
   0x2   :  { %11 = vsyncpa [#allocation5], 0  ;;  %s3320_s21 = smov [#allocation2]   ;;  %s33_s25 = sshll.u32 %s3504_s3, 4  ;;  %s34_s25 = int_to_ptr.hbm [resolvable:$true] %s33_s25 }
   0x3   :  { %s20_s22 = sshll.u32 %s3320_s21, 4  ;;  %s3321_s26 = smov 448   ;;  %s21_s22 = int_to_ptr.vmem [resolvable:$true] %s20_s22 }
   0x4   :  { %s3322_s27 = smov 28   ;;  %s3323_s28 = smov [#allocation4]  }
   0x5   :  { %26 = dma.hbm_to_vmem [thread:$0]  %s19_s20, 14336, %s21_s22, [#allocation3], %s3321_s26, %s3321_s26, %s3322_s27  }
   0x6   :  { %s35_s29 = sshll.u32 %s3323_s28, 4  ;;  %s3324_s30 = smov 128   ;;  %s36_s29 = int_to_ptr.vmem [resolvable:$true] %s35_s29 }
   0x7   :  { %s3325_s6 = smov 8  }
   0x8   :  { %41 = dma.hbm_to_vmem [thread:$0]  %s34_s25, 14336, %s36_s29, [#allocation5], %s3324_s30, %s3324_s30, %s3325_s6  }
   0x9   :  { %3316 = dma.done.wait [#allocation3], 14336  }
   0xa   :  { %3317 = vsyncadd [#allocation3], 4294952960 }
   0xb   :  { %3318 = dma.done.wait [#allocation5], 14336  }
   0xc   :  { %3319 = vsyncadd [#allocation5], 4294952960  ;;  %v2304_v0 = vld [vmem:[#allocation2 + $0x188] sm:$0xf]  ;;  %v3062_v1 = vld [vmem:[#allocation2 + $0x1a0] sm:$0xf0] }
   0xd   :  { %v3059_v2 = vld [vmem:[#allocation2 + $0x18c] sm:$0xf]  ;;  %v2305_v3 = vor.u32 %v3062_v1, %v2304_v0  ;;  %v2306_v4 = vld [vmem:[#allocation2 + $0x1a4] sm:$0xf0]  ;;  %v2312_v5 = vld [vmem:[#allocation2 + $0x190] sm:$0xf] }
   0xe   :  { %v3063_v6 = vld [vmem:[#allocation2 + $0x1a8] sm:$0xf0]  ;;  %v2309_v7 = vor.u32 %v3059_v2, %v2306_v4  ;;  %v2276_v9 = vld [vmem:[#allocation2 + $0x150] sm:$0xf]  ;;  %v3052_v11 = vld [vmem:[#allocation2 + $0x154] sm:$0xf] }
   0xf   :  { %v2313_v8 = vor.u32 %v3063_v6, %v2312_v5  ;;  %814 = vmatpush.bf16.xpose.msra.mxu0 %v2305_v3  ;;  %v3055_v10 = vld [vmem:[#allocation2 + $0x168] sm:$0xf0]  ;;  %v2278_v12 = vld [vmem:[#allocation2 + $0x16c] sm:$0xf0]  ;;  %v2284_v13 = vld [vmem:[#allocation2 + $0x158] sm:$0xf] }
  0x10   :  { %827 = vmatpush.bf16.xpose.msra.mxu1 %v2309_v7  ;;  %v3056_v14 = vld [vmem:[#allocation2 + $0x170] sm:$0xf0]  ;;  %v2277_v15 = vor.u32 %v3055_v10, %v2276_v9  ;;  %v2281_v16 = vor.u32 %v3052_v11, %v2278_v12  ;;  %v2248_v18 = vld [vmem:[#allocation2 + $0x118] sm:$0xf]  ;;  %v3045_v20 = vld [vmem:[#allocation2 + $0x11c] sm:$0xf] }
  0x11   :  { %840 = vmatpush.bf16.xpose.msra.mxu2 %v2313_v8  ;;  %v2285_v17 = vor.u32 %v3056_v14, %v2284_v13  ;;  %v3048_v19 = vld [vmem:[#allocation2 + $0x130] sm:$0xf0]  ;;  %v2314_v22 = vld [vmem:[#allocation2 + $0x1ac] sm:$0xf0]  ;;  %v2250_v23 = vld [vmem:[#allocation2 + $0x134] sm:$0xf0] }
  0x12   :  { %v3060_v21 = vld [vmem:[#allocation2 + $0x194] sm:$0xf]  ;;  %v2256_v24 = vld [vmem:[#allocation2 + $0x120] sm:$0xf]  ;;  %v3049_v25 = vld [vmem:[#allocation2 + $0x138] sm:$0xf0]  ;;  %v2249_v27 = vor.u32 %v3048_v19, %v2248_v18  ;;  %v2253_v28 = vor.u32 %v3045_v20, %v2250_v23 }
  0x13   :  { %v2317_v26 = vor.u32 %v3060_v21, %v2314_v22  ;;  %v2257_v29 = vor.u32 %v3049_v25, %v2256_v24  ;;  %v3053_v30 = vld [vmem:[#allocation2 + $0x15c] sm:$0xf]  ;;  %v2286_v31 = vld [vmem:[#allocation2 + $0x174] sm:$0xf0]  ;;  %v2220_v33 = vld [vmem:[#allocation2 + $0xe0] sm:$0xf] }
  0x14   :  { %v2289_v32 = vor.u32 %v3053_v30, %v2286_v31  ;;  %v3041_v34 = vld [vmem:[#allocation2 + $0xf8] sm:$0xf0]  ;;  %v3038_v35 = vld [vmem:[#allocation2 + $0xe4] sm:$0xf]  ;;  %v2222_v36 = vld [vmem:[#allocation2 + $0xfc] sm:$0xf0] }
  0x15   :  { %853 = vmatpush.bf16.xpose.msra.mxu3 %v2317_v26  ;;  %v2228_v37 = vld [vmem:[#allocation2 + $0xe8] sm:$0xf]  ;;  %v3042_v38 = vld [vmem:[#allocation2 + $0x100] sm:$0xf0]  ;;  %v2221_v39 = vor.u32 %v3041_v34, %v2220_v33  ;;  %v2225_v40 = vor.u32 %v3038_v35, %v2222_v36  ;;  %v2258_v43 = vld [vmem:[#allocation2 + $0x13c] sm:$0xf0] }
  0x16   :  { %v2229_v41 = vor.u32 %v3042_v38, %v2228_v37  ;;  %v3046_v42 = vld [vmem:[#allocation2 + $0x124] sm:$0xf]  ;;  %v2192_v45 = vld [vmem:[#allocation2 + $0xa8] sm:$0xf]  ;;  %v3031_v47 = vld [vmem:[#allocation2 + $0xac] sm:$0xf] }
  0x17   :  { %815 = vmatpush.bf16.xpose.msra.mxu0 %v2277_v15  ;;  %v2261_v44 = vor.u32 %v3046_v42, %v2258_v43  ;;  %v3034_v46 = vld [vmem:[#allocation2 + $0xc0] sm:$0xf0]  ;;  %v2194_v48 = vld [vmem:[#allocation2 + $0xc4] sm:$0xf0]  ;;  %v2200_v49 = vld [vmem:[#allocation2 + $0xb0] sm:$0xf] }
  0x18   :  { %828 = vmatpush.bf16.xpose.msra.mxu1 %v2281_v16  ;;  %v3035_v50 = vld [vmem:[#allocation2 + $0xc8] sm:$0xf0]  ;;  %v2193_v51 = vor.u32 %v3034_v46, %v2192_v45  ;;  %v2197_v52 = vor.u32 %v3031_v47, %v2194_v48  ;;  %v2230_v55 = vld [vmem:[#allocation2 + $0x104] sm:$0xf0]  ;;  %v2164_v57 = vld [vmem:[#allocation2 + $0x70] sm:$0xf] }
  0x19   :  { %841 = vmatpush.bf16.xpose.msra.mxu2 %v2285_v17  ;;  %v2201_v53 = vor.u32 %v3035_v50, %v2200_v49  ;;  %v3039_v54 = vld [vmem:[#allocation2 + $0xec] sm:$0xf]  ;;  %v3024_v59 = vld [vmem:[#allocation2 + $0x74] sm:$0xf]  ;;  %v2166_v60 = vld [vmem:[#allocation2 + $0x8c] sm:$0xf0] }
  0x1a   :  { %v2233_v56 = vor.u32 %v3039_v54, %v2230_v55  ;;  %v3027_v58 = vld [vmem:[#allocation2 + $0x88] sm:$0xf0]  ;;  %v2172_v61 = vld [vmem:[#allocation2 + $0x78] sm:$0xf]  ;;  %v3028_v62 = vld [vmem:[#allocation2 + $0x90] sm:$0xf0]  ;;  %v2169_v0 = vor.u32 %v3024_v59, %v2166_v60 }
  0x1b   :  { %v2165_v63 = vor.u32 %v3027_v58, %v2164_v57  ;;  %v2173_v1 = vor.u32 %v3028_v62, %v2172_v61  ;;  %v3032_v2 = vld [vmem:[#allocation2 + $0xb4] sm:$0xf]  ;;  %v2202_v3 = vld [vmem:[#allocation2 + $0xcc] sm:$0xf0]  ;;  %v2136_v5 = vld [vmem:[#allocation2 + $0x38] sm:$0xf] }
  0x1c   :  { %v2205_v4 = vor.u32 %v3032_v2, %v2202_v3  ;;  %v3020_v6 = vld [vmem:[#allocation2 + $0x50] sm:$0xf0]  ;;  %v3017_v7 = vld [vmem:[#allocation2 + $0x3c] sm:$0xf]  ;;  %v2138_v8 = vld [vmem:[#allocation2 + $0x54] sm:$0xf0] }
  0x1d   :  { %854 = vmatpush.bf16.xpose.msra.mxu3 %v2289_v32  ;;  %v2144_v9 = vld [vmem:[#allocation2 + $0x40] sm:$0xf]  ;;  %v3021_v10 = vld [vmem:[#allocation2 + $0x58] sm:$0xf0]  ;;  %v2137_v11 = vor.u32 %v3020_v6, %v2136_v5  ;;  %v2141_v12 = vor.u32 %v3017_v7, %v2138_v8  ;;  %v2174_v15 = vld [vmem:[#allocation2 + $0x94] sm:$0xf0] }
  0x1e   :  { %v2145_v13 = vor.u32 %v3021_v10, %v2144_v9  ;;  %v3025_v14 = vld [vmem:[#allocation2 + $0x7c] sm:$0xf]  ;;  %v2108_v16 = vld [vmem:[#allocation2] sm:$0xf]  ;;  %v3010_v19 = vld [vmem:[#allocation2 + $0x4] sm:$0xf] }
  0x1f   :  { %816 = vmatpush.bf16.xpose.msra.mxu0 %v2249_v27  ;;  %v2177_v17 = vor.u32 %v3025_v14, %v2174_v15  ;;  %v3013_v18 = vld [vmem:[#allocation2 + $0x18] sm:$0xf0]  ;;  %v2110_v20 = vld [vmem:[#allocation2 + $0x1c] sm:$0xf0]  ;;  %v2116_v21 = vld [vmem:[#allocation2 + $0x8] sm:$0xf] }
  0x20   :  { %829 = vmatpush.bf16.xpose.msra.mxu1 %v2253_v28  ;;  %v3014_v22 = vld [vmem:[#allocation2 + $0x20] sm:$0xf0]  ;;  %v2320_v23 = vld [vmem:[#allocation2 + $0x198] sm:$0xf]  ;;  %v3064_v24 = vld [vmem:[#allocation2 + $0x1b0] sm:$0xf0]  ;;  %v2109_v27 = vor.u32 %v3013_v18, %v2108_v16  ;;  %v2113_v30 = vor.u32 %v3010_v19, %v2110_v20 }
  0x21   :  { %842 = vmatpush.bf16.xpose.msra.mxu2 %v2257_v29  ;;  %v3061_v25 = vld [vmem:[#allocation2 + $0x19c] sm:$0xf]  ;;  %v2322_v26 = vld [vmem:[#allocation2 + $0x1b4] sm:$0xf0]  ;;  %v2328_v28 = vld [vmem:[#allocation2 + $0x1a0] sm:$0xf]  ;;  %v2117_v31 = vor.u32 %v3014_v22, %v2116_v21  ;;  %v2321_v34 = vor.u32 %v3064_v24, %v2320_v23 }
  0x22   :  { %v3065_v29 = vld [vmem:[#allocation2 + $0x1b8] sm:$0xf0]  ;;  %v3018_v32 = vld [vmem:[#allocation2 + $0x44] sm:$0xf]  ;;  %v2146_v33 = vld [vmem:[#allocation2 + $0x5c] sm:$0xf0]  ;;  %v2325_v35 = vor.u32 %v3061_v25, %v2322_v26 }
  0x23   :  { %v2329_v36 = vor.u32 %v3065_v29, %v2328_v28  ;;  %v2149_v37 = vor.u32 %v3018_v32, %v2146_v33  ;;  %v2292_v38 = vld [vmem:[#allocation2 + $0x160] sm:$0xf]  ;;  %v2300_v42 = vld [vmem:[#allocation2 + $0x168] sm:$0xf]  ;;  %v3058_v43 = vld [vmem:[#allocation2 + $0x180] sm:$0xf0] }
  0x24   :  { %v2118_v45 = vld [vmem:[#allocation2 + $0x24] sm:$0xf0]  ;;  %v2301_v48 = vor.u32 %v3058_v43, %v2300_v42  ;;  %v52_v49 = vld [vmem:[%s3501_s0] sm:$0xff]  ;;  %v3118_v54 = vld [vmem:[#allocation2 + $0x360] sm:$0xf0]  ;;  %vm2015_vm6 = vcmask 1041408  }
  0x25   :  { %855 = vmatpush.bf16.xpose.msra.mxu3 %v2261_v44  ;;  %v3011_v44 = vld [vmem:[#allocation2 + $0xc] sm:$0xf]  ;;  %v56_v55 = vld [vmem:[%s3501_s0 + $0x1c] sm:$0xff]  ;;  %v58_v58 = vld [vmem:[%s3501_s0 + $0x2a] sm:$0xff]  ;;  %68 = vst [vmem:[#allocation1] ss:$4 sm:$0xff] %v52_v49 }
  0x26   :  { %v2121_v50 = vor.u32 %v3011_v44, %v2118_v45  ;;  %v3047_v59 = vld [vmem:[#allocation2 + $0x12c] sm:$0xf]  ;;  %v2266_v60 = vld [vmem:[#allocation2 + $0x144] sm:$0xf0]  ;;  %v2272_v61 = vld [vmem:[#allocation2 + $0x130] sm:$0xf] }
  0x27   :  { %817 = vmatpush.bf16.xpose.msra.mxu0 %v2221_v39  ;;  %v3057_v39 = vld [vmem:[#allocation2 + $0x178] sm:$0xf0]  ;;  %v3051_v62 = vld [vmem:[#allocation2 + $0x148] sm:$0xf0]  ;;  %72 = vst [vmem:[#allocation1 + $0x2] ss:$4 sm:$0xff] %v56_v55 }
  0x28   :  { %830 = vmatpush.bf16.xpose.msra.mxu1 %v2225_v40  ;;  %v3054_v40 = vld [vmem:[#allocation2 + $0x164] sm:$0xf]  ;;  %v2293_v46 = vor.u32 %v3057_v39, %v2292_v38  ;;  %74 = vst [vmem:[#allocation1 + $0x3] ss:$4 sm:$0xff] %v58_v58  ;;  %v2500_v2 = vld [vmem:[#allocation2 + $0x310] sm:$0xf] }
  0x29   :  { %843 = vmatpush.bf16.xpose.msra.mxu2 %v2229_v41  ;;  %v2294_v41 = vld [vmem:[#allocation2 + $0x17c] sm:$0xf0]  ;;  %v3111_v3 = vld [vmem:[#allocation2 + $0x328] sm:$0xf0]  ;;  %v3040_v6 = vld [vmem:[#allocation2 + $0xf4] sm:$0xf] }
  0x2a   :  { %v2297_v47 = vor.u32 %v3054_v40, %v2294_v41  ;;  %v3043_v5 = vld [vmem:[#allocation2 + $0x108] sm:$0xf0]  ;;  %v2501_v7 = vor.u32 %v3111_v3, %v2500_v2  ;;  %v2238_v8 = vld [vmem:[#allocation2 + $0x10c] sm:$0xf0]  ;;  %v2244_v9 = vld [vmem:[#allocation2 + $0xf8] sm:$0xf] }
  0x2b   :  { %v3044_v10 = vld [vmem:[#allocation2 + $0x110] sm:$0xf0]  ;;  %v2208_v20 = vld [vmem:[#allocation2 + $0xb8] sm:$0xf]  ;;  %v53_v26 = vld [vmem:[%s3501_s0 + $0x8] sm:$0x3f] }
  0x2c   :  { %v2245_v19 = vor.u32 %v3044_v10, %v2244_v9  ;;  %v3036_v21 = vld [vmem:[#allocation2 + $0xd0] sm:$0xf0]  ;;  %v2472_v24 = vld [vmem:[#allocation2 + $0x2d8] sm:$0xf]  ;;  %v3037_v32 = vld [vmem:[#allocation2 + $0xd8] sm:$0xf0] }
  0x2d   :  { %856 = vmatpush.bf16.xpose.msra.mxu3 %v2233_v56  ;;  %v3050_v56 = vld [vmem:[#allocation2 + $0x140] sm:$0xf0]  ;;  %v3104_v25 = vld [vmem:[#allocation2 + $0x2f0] sm:$0xf0]  ;;  %v2210_v28 = vld [vmem:[#allocation2 + $0xd4] sm:$0xf0] }
  0x2e   :  { %v2473_v29 = vor.u32 %v3104_v25, %v2472_v24  ;;  %v57_v33 = vld [vmem:[%s3501_s0 + $0x24] sm:$0x3f]  ;;  %76 = vst [vmem:[#allocation1 + $0x20] ss:$4 sm:$0xff] %v53_v26  ;;  %v3026_v43 = vld [vmem:[#allocation2 + $0x84] sm:$0xf] }
  0x2f   :  { %818 = vmatpush.bf16.xpose.msra.mxu0 %v2193_v51  ;;  %v54_v51 = vld [vmem:[%s3501_s0 + $0xe] sm:$0xff]  ;;  %80 = vst [vmem:[#allocation1 + $0x22] ss:$4 sm:$0xff] %v57_v33  ;;  %v2444_v38 = vld [vmem:[#allocation2 + $0x2a0] sm:$0xf]  ;;  %vm2017_vm7 = vcmask 1045508  }
  0x30   :  { %831 = vmatpush.bf16.xpose.msra.mxu1 %v2197_v52  ;;  %v2264_v52 = vld [vmem:[#allocation2 + $0x128] sm:$0xf]  ;;  %70 = vst [vmem:[#allocation1 + $0x1] ss:$4 sm:$0xff] %v54_v51  ;;  %v3097_v39 = vld [vmem:[#allocation2 + $0x2b8] sm:$0xf0] }
  0x31   :  { %844 = vmatpush.bf16.xpose.msra.mxu2 %v2201_v53  ;;  %v2528_v53 = vld [vmem:[#allocation2 + $0x348] sm:$0xf]  ;;  %v2180_v40 = vld [vmem:[#allocation2 + $0x80] sm:$0xf]  ;;  %v2445_v41 = vor.u32 %v3097_v39, %v2444_v38  ;;  %v3029_v42 = vld [vmem:[#allocation2 + $0x98] sm:$0xf0] }
  0x32   :  { %v2529_v57 = vor.u32 %v3118_v54, %v2528_v53  ;;  %v2182_v44 = vld [vmem:[#allocation2 + $0x9c] sm:$0xf0]  ;;  %v2188_v45 = vld [vmem:[#allocation2 + $0x88] sm:$0xf]  ;;  %v3022_v54 = vld [vmem:[#allocation2 + $0x60] sm:$0xf0] }
  0x33   :  { %v2416_v49 = vld [vmem:[#allocation2 + $0x268] sm:$0xf]  ;;  %v3019_v55 = vld [vmem:[#allocation2 + $0x4c] sm:$0xf]  ;;  %v3012_v3 = vld [vmem:[#allocation2 + $0x14] sm:$0xf] }
  0x34   :  { %v2152_v53 = vld [vmem:[#allocation2 + $0x48] sm:$0xf]  ;;  %v3023_v58 = vld [vmem:[#allocation2 + $0x68] sm:$0xf0]  ;;  %v2536_v9 = vld [vmem:[#allocation2 + $0x350] sm:$0xf] }
  0x35   :  { %857 = vmatpush.bf16.xpose.msra.mxu3 %v2205_v4  ;;  %v2236_v4 = vld [vmem:[#allocation2 + $0xf0] sm:$0xf]  ;;  %v3015_v2 = vld [vmem:[#allocation2 + $0x28] sm:$0xf0]  ;;  %v3112_v33 = vld [vmem:[#allocation2 + $0x330] sm:$0xf0] }
  0x36   :  { %v2237_v16 = vor.u32 %v3043_v5, %v2236_v4  ;;  %v2126_v4 = vld [vmem:[#allocation2 + $0x2c] sm:$0xf0]  ;;  %v2132_v5 = vld [vmem:[#allocation2 + $0x18] sm:$0xf]  ;;  %v3119_v10 = vld [vmem:[#allocation2 + $0x368] sm:$0xf0] }
  0x37   :  { %819 = vmatpush.bf16.xpose.msra.mxu0 %v2165_v63  ;;  %v2265_v63 = vor.u32 %v3050_v56, %v2264_v52  ;;  %v84_v15 = vld.sshfl [vmem:[#allocation1 + $0x8] sm:$0xff pattern:$0x73625140]  ;;  %v86_v22 = vld.sshfl [vmem:[#allocation1 + $0x18] sm:$0xff pattern:$0x73625140] }
  0x38   :  { %832 = vmatpush.bf16.xpose.msra.mxu1 %v2169_v0  ;;  %v2269_v0 = vor.u32 %v3047_v59, %v2266_v60  ;;  %v3378_v18 = vpack.c.bf16 %v84_v15, %v84_v15  ;;  %v3383_v23 = vpack.c.bf16 %v86_v22, %v86_v22  ;;  %v2154_v56 = vld [vmem:[#allocation2 + $0x64] sm:$0xf0]  ;;  %v2153_v59 = vor.u32 %v3022_v54, %v2152_v53  ;;  %v2332_v38 = vld [vmem:[#allocation2 + $0x1c0] sm:$0xf]  ;;  %v3069_v39 = vld [vmem:[#allocation2 + $0x1d8] sm:$0xf0] }
  0x39   :  { %845 = vmatpush.bf16.xpose.msra.mxu2 %v2173_v1  ;;  %v2273_v1 = vor.u32 %v3051_v62, %v2272_v61  ;;  %v2157_v60 = vor.u32 %v3019_v55, %v2154_v56  ;;  %v2388_v61 = vld [vmem:[#allocation2 + $0x230] sm:$0xf]  ;;  %v3083_v62 = vld [vmem:[#allocation2 + $0x248] sm:$0xf0]  ;;  %v2537_v22 = vor.u32 %v3119_v10, %v2536_v9  ;;  %v2516_v56 = vld [vmem:[#allocation2 + $0x320] sm:$0xf] }
  0x3a   :  { %v2424_v9 = vld [vmem:[#allocation2 + $0x270] sm:$0xf]  ;;  %v3091_v10 = vld [vmem:[#allocation2 + $0x288] sm:$0xf0] }
  0x3d   :  { %858 = vmatpush.bf16.xpose.msra.mxu3 %v2177_v17  ;;  %v2241_v17 = vor.u32 %v3040_v6, %v2238_v8  ;;  %v3016_v6 = vld [vmem:[#allocation2 + $0x30] sm:$0xf0]  ;;  %v2530_v8 = vld [vmem:[#allocation2 + $0x364] sm:$0xf0] }
  0x3f   :  { %820 = vmatpush.bf16.xpose.msra.mxu0 %v2137_v11  ;;  %v85_v11 = vld.sshfl [vmem:[#allocation1 + $0x10] sm:$0xff pattern:$0x73625140] }
  0x40   :  { %833 = vmatpush.bf16.xpose.msra.mxu1 %v2141_v12  ;;  %v83_v12 = vld.sshfl [vmem:[#allocation1] sm:$0xff pattern:$0x73625140] }
  0x41   :  { %846 = vmatpush.bf16.xpose.msra.mxu2 %v2145_v13  ;;  %v3374_v13 = vpack.c.bf16 %v85_v11, %v85_v11  ;;  %v3376_v14 = vpack.c.bf16 %v83_v12, %v83_v12  ;;  %v3116_v11 = vld [vmem:[#allocation2 + $0x354] sm:$0xf]  ;;  %v2538_v12 = vld [vmem:[#allocation2 + $0x36c] sm:$0xf0] }
  0x42   :  { %v2541_v24 = vor.u32 %v3116_v11, %v2538_v12  ;;  %v3088_v11 = vld [vmem:[#allocation2 + $0x274] sm:$0xf]  ;;  %v2426_v12 = vld [vmem:[#allocation2 + $0x28c] sm:$0xf0] }
  0x45   :  { %859 = vmatpush.bf16.xpose.msra.mxu3 %v2149_v37 }
  0x47   :  { %821 = vmatpush.bf16.xpose.msra.mxu0 %v2109_v27  ;;  %v3033_v27 = vld [vmem:[#allocation2 + $0xbc] sm:$0xf] }
  0x48   :  { %834 = vmatpush.bf16.xpose.msra.mxu1 %v2113_v30  ;;  %v55_v30 = vld [vmem:[%s3501_s0 + $0x16] sm:$0x3f] }
  0x49   :  { %847 = vmatpush.bf16.xpose.msra.mxu2 %v2117_v31  ;;  %v2216_v31 = vld [vmem:[#allocation2 + $0xc0] sm:$0xf]  ;;  %78 = vst [vmem:[#allocation1 + $0x21] ss:$4 sm:$0xff] %v55_v30  ;;  %v2502_v30 = vld [vmem:[#allocation2 + $0x32c] sm:$0xf0] }
  0x4a   :  { %v2217_v37 = vor.u32 %v3037_v32, %v2216_v31  ;;  %v2508_v31 = vld [vmem:[#allocation2 + $0x318] sm:$0xf] }
  0x4d   :  { %860 = vmatpush.bf16.xpose.msra.mxu3 %v2121_v50  ;;  %v3090_v50 = vld [vmem:[#allocation2 + $0x280] sm:$0xf0] }
  0x4e   :  { %822 = vmatmul.bf16.vlgmr.msra.gmra.mxu0 %v3376_v14  ;;  %v2417_v52 = vor.u32 %v3090_v50, %v2416_v49  ;;  %v2480_v49 = vld [vmem:[#allocation2 + $0x2e0] sm:$0xf]  ;;  %v3105_v50 = vld [vmem:[#allocation2 + $0x2f8] sm:$0xf0] }
  0x4f   :  { %866 = vmatpush.bf16.xpose.msrb.mxu0 %v2321_v34  ;;  %835 = vmatmul.bf16.vlgmr.msra.gmra.mxu1 %v3378_v18  ;;  %v59_v34 = vld [vmem:[%s3501_s0 + $0x32] sm:$0x3f]  ;;  %v2481_v54 = vor.u32 %v3105_v50, %v2480_v49  ;;  %v3066_v49 = vld [vmem:[#allocation2 + $0x1c4] sm:$0xf]  ;;  %v2334_v50 = vld [vmem:[#allocation2 + $0x1dc] sm:$0xf0] }
  0x50   :  { %879 = vmatpush.bf16.xpose.msrb.mxu1 %v2325_v35  ;;  %848 = vmatmul.bf16.vlgmr.msra.gmra.mxu2 %v3374_v13  ;;  %v2209_v35 = vor.u32 %v3036_v21, %v2208_v20  ;;  %82 = vst [vmem:[#allocation1 + $0x23] ss:$4 sm:$0xff] %v59_v34  ;;  %v2133_v20 = vor.u32 %v3016_v6, %v2132_v5  ;;  %v3109_v34 = vld [vmem:[#allocation2 + $0x31c] sm:$0xf]  ;;  %v3106_v5 = vld [vmem:[#allocation2 + $0x300] sm:$0xf0] }
  0x51   :  { %892 = vmatpush.bf16.xpose.msrb.mxu2 %v2329_v36  ;;  %v2213_v36 = vor.u32 %v3033_v27, %v2210_v28 }
  0x54   :  { %861 = vmatmul.bf16.vlgmr.msra.gmra.mxu3 %v3383_v23 }
  0x55   :  { %905 = vmatpush.bf16.xpose.msrb.mxu3 %v2529_v57  ;;  %v2160_v57 = vld [vmem:[#allocation2 + $0x50] sm:$0xf] }
  0x57   :  { %867 = vmatpush.bf16.xpose.msrb.mxu0 %v2293_v46  ;;  %v3030_v46 = vld [vmem:[#allocation2 + $0xa0] sm:$0xf0]  ;;  %v87_v26 = vld.sshfl [vmem:[#allocation1 + $0x20] sm:$0xff pattern:$0x73625140] }
  0x58   :  { %880 = vmatpush.bf16.xpose.msrb.mxu1 %v2297_v47  ;;  %v2181_v47 = vor.u32 %v3029_v42, %v2180_v40  ;;  %v2189_v51 = vor.u32 %v3030_v46, %v2188_v45  ;;  %v88_v27 = vld.sshfl [vmem:[#allocation1 + $0x28] sm:$0xff pattern:$0x73625140]  ;;  %v89_v28 = vld.sshfl [vmem:[#allocation1 + $0x30] sm:$0xff pattern:$0x73625140]  ;;  %v3398_v32 = vpack.c.bf16 %v87_v26, %v87_v26 }
  0x59   :  { %893 = vmatpush.bf16.xpose.msrb.mxu2 %v2301_v48  ;;  %v2185_v48 = vor.u32 %v3026_v43, %v2182_v44  ;;  %v2333_v43 = vor.u32 %v3069_v39, %v2332_v38  ;;  %v2544_v44 = vld [vmem:[#allocation2 + $0x358] sm:$0xf]  ;;  %v3120_v45 = vld [vmem:[#allocation2 + $0x370] sm:$0xf0]  ;;  %v3081_v26 = vld [vmem:[#allocation2 + $0x23c] sm:$0xf] }
  0x5a   :  { %v2545_v46 = vor.u32 %v3120_v45, %v2544_v44  ;;  %v2362_v38 = vld [vmem:[#allocation2 + $0x214] sm:$0xf0]  ;;  %v2368_v39 = vld [vmem:[#allocation2 + $0x200] sm:$0xf]  ;;  %v3085_v45 = vld [vmem:[#allocation2 + $0x258] sm:$0xf0] }
  0x5b   :  { %v2404_v44 = vld [vmem:[#allocation2 + $0x240] sm:$0xf] }
  0x5d   :  { %906 = vmatpush.bf16.xpose.msrb.mxu3 %v2501_v7  ;;  %v3115_v7 = vld [vmem:[#allocation2 + $0x34c] sm:$0xf] }
  0x5e   :  { %v2533_v21 = vor.u32 %v3115_v7, %v2530_v8  ;;  %v3087_v7 = vld [vmem:[#allocation2 + $0x26c] sm:$0xf]  ;;  %v2418_v8 = vld [vmem:[#allocation2 + $0x284] sm:$0xf0] }
  0x5f   :  { %868 = vmatpush.bf16.xpose.msrb.mxu0 %v2265_v63  ;;  %v2161_v63 = vor.u32 %v3023_v58, %v2160_v57  ;;  %v3113_v57 = vld [vmem:[#allocation2 + $0x338] sm:$0xf0] }
  0x60   :  { %881 = vmatpush.bf16.xpose.msrb.mxu1 %v2269_v0  ;;  %v2389_v0 = vor.u32 %v3083_v62, %v2388_v61  ;;  %v2517_v58 = vor.u32 %v3113_v57, %v2516_v56  ;;  %v2452_v61 = vld [vmem:[#allocation2 + $0x2a8] sm:$0xf]  ;;  %v3098_v62 = vld [vmem:[#allocation2 + $0x2c0] sm:$0xf0]  ;;  %v2546_v56 = vld [vmem:[#allocation2 + $0x374] sm:$0xf0] }
  0x61   :  { %894 = vmatpush.bf16.xpose.msrb.mxu2 %v2273_v1  ;;  %v2124_v1 = vld [vmem:[#allocation2 + $0x10] sm:$0xf]  ;;  %v2552_v57 = vld [vmem:[#allocation2 + $0x360] sm:$0xf] }
  0x62   :  { %v2125_v15 = vor.u32 %v3015_v2, %v2124_v1  ;;  %v2453_v2 = vor.u32 %v3098_v62, %v2452_v61  ;;  %v3137_v61 = vld [vmem:[#allocation4 + $0x74] sm:$0xf0]  ;;  %v2376_v62 = vld [vmem:[#allocation2 + $0x208] sm:$0xf] }
  0x65   :  { %907 = vmatpush.bf16.xpose.msrb.mxu3 %v2473_v29  ;;  %v3108_v29 = vld [vmem:[#allocation2 + $0x314] sm:$0xf] }
  0x66   :  { %v2505_v40 = vor.u32 %v3108_v29, %v2502_v30  ;;  %v2432_v29 = vld [vmem:[#allocation2 + $0x278] sm:$0xf]  ;;  %v3092_v30 = vld [vmem:[#allocation2 + $0x290] sm:$0xf0] }
  0x67   :  { %869 = vmatpush.bf16.xpose.msrb.mxu0 %v2237_v16  ;;  %v2129_v16 = vor.u32 %v3012_v3, %v2126_v4  ;;  %v2488_v4 = vld [vmem:[#allocation2 + $0x2e8] sm:$0xf] }
  0x68   :  { %882 = vmatpush.bf16.xpose.msrb.mxu1 %v2241_v17  ;;  %v2360_v17 = vld [vmem:[#allocation2 + $0x1f8] sm:$0xf]  ;;  %v2489_v6 = vor.u32 %v3106_v5, %v2488_v4 }
  0x69   :  { %895 = vmatpush.bf16.xpose.msrb.mxu2 %v2245_v19  ;;  %v3076_v19 = vld [vmem:[#allocation2 + $0x210] sm:$0xf0] }
  0x6a   :  { %v2361_v25 = vor.u32 %v3076_v19, %v2360_v17  ;;  %v2425_v17 = vor.u32 %v3091_v10, %v2424_v9  ;;  %v2429_v19 = vor.u32 %v3088_v11, %v2426_v12  ;;  %v3114_v9 = vld [vmem:[#allocation2 + $0x340] sm:$0xf0]  ;;  %v2604_v10 = vld [vmem:[#allocation4 + $0x60] sm:$0xf]  ;;  %v3135_v11 = vld [vmem:[#allocation4 + $0x64] sm:$0xf0] }
  0x6b   :  { %v2348_v12 = vld [vmem:[#allocation2 + $0x1d0] sm:$0xf] }
  0x6d   :  { %908 = vmatpush.bf16.xpose.msrb.mxu3 %v2445_v41  ;;  %v2509_v41 = vor.u32 %v3112_v33, %v2508_v31 }
  0x6f   :  { %870 = vmatpush.bf16.xpose.msrb.mxu0 %v2209_v35  ;;  %v2510_v35 = vld [vmem:[#allocation2 + $0x334] sm:$0xf0] }
  0x70   :  { %883 = vmatpush.bf16.xpose.msrb.mxu1 %v2213_v36  ;;  %v3400_v36 = vpack.c.bf16 %v88_v27, %v88_v27  ;;  %v2513_v42 = vor.u32 %v3109_v34, %v2510_v35  ;;  %v2398_v27 = vld [vmem:[#allocation2 + $0x254] sm:$0xf0]  ;;  %v2433_v34 = vor.u32 %v3092_v30, %v2432_v29  ;;  %v3073_v35 = vld [vmem:[#allocation2 + $0x1fc] sm:$0xf] }
  0x71   :  { %896 = vmatpush.bf16.xpose.msrb.mxu2 %v2217_v37  ;;  %v3402_v37 = vpack.c.bf16 %v89_v28, %v89_v28  ;;  %v2401_v33 = vor.u32 %v3081_v26, %v2398_v27  ;;  %v3133_v26 = vld [vmem:[#allocation4 + $0x54] sm:$0xf0] }
  0x72   :  { %v2468_v30 = vld [vmem:[#allocation2 + $0x2b8] sm:$0xf] }
  0x75   :  { %909 = vmatpush.bf16.xpose.msrb.mxu3 %v2417_v52  ;;  %v2482_v52 = vld [vmem:[#allocation2 + $0x2fc] sm:$0xf0] }
  0x77   :  { %871 = vmatpush.bf16.xpose.msrb.mxu0 %v2181_v47  ;;  %v3101_v47 = vld [vmem:[#allocation2 + $0x2dc] sm:$0xf] }
  0x78   :  { %884 = vmatpush.bf16.xpose.msrb.mxu1 %v2185_v48  ;;  %v2474_v48 = vld [vmem:[#allocation2 + $0x2f4] sm:$0xf0] }
  0x79   :  { %897 = vmatpush.bf16.xpose.msrb.mxu2 %v2189_v51  ;;  %v3102_v51 = vld [vmem:[#allocation2 + $0x2e4] sm:$0xf]  ;;  %v2477_v53 = vor.u32 %v3101_v47, %v2474_v48  ;;  %v2405_v48 = vor.u32 %v3085_v45, %v2404_v44  ;;  %v3129_v44 = vld [vmem:[#allocation4 + $0x34] sm:$0xf0] }
  0x7a   :  { %v2485_v55 = vor.u32 %v3102_v51, %v2482_v52  ;;  %v2340_v51 = vld [vmem:[#allocation2 + $0x1c8] sm:$0xf]  ;;  %v3070_v52 = vld [vmem:[#allocation2 + $0x1e0] sm:$0xf0] }
  0x7d   :  { %910 = vmatpush.bf16.xpose.msrb.mxu3 %v2389_v0  ;;  %v2454_v0 = vld [vmem:[#allocation2 + $0x2c4] sm:$0xf0] }
  0x7f   :  { %872 = vmatpush.bf16.xpose.msrb.mxu0 %v2153_v59  ;;  %v3094_v59 = vld [vmem:[#allocation2 + $0x2a4] sm:$0xf] }
  0x80   :  { %885 = vmatpush.bf16.xpose.msrb.mxu1 %v2157_v60  ;;  %v2446_v60 = vld [vmem:[#allocation2 + $0x2bc] sm:$0xf0] }
  0x81   :  { %898 = vmatpush.bf16.xpose.msrb.mxu2 %v2161_v63  ;;  %v3095_v63 = vld [vmem:[#allocation2 + $0x2ac] sm:$0xf]  ;;  %v2449_v1 = vor.u32 %v3094_v59, %v2446_v60  ;;  %v2612_v59 = vld [vmem:[#allocation4 + $0x70] sm:$0xf]  ;;  %v2337_v60 = vor.u32 %v3066_v49, %v2334_v50  ;;  %v2406_v50 = vld [vmem:[#allocation2 + $0x25c] sm:$0xf0] }
  0x82   :  { %v2457_v3 = vor.u32 %v3095_v63, %v2454_v0  ;;  %v3078_v63 = vld [vmem:[#allocation2 + $0x220] sm:$0xf0]  ;;  %v2341_v0 = vor.u32 %v3070_v52, %v2340_v51  ;;  %v2613_v4 = vor.u32 %v3137_v61, %v2612_v59  ;;  %v2412_v51 = vld [vmem:[#allocation2 + $0x248] sm:$0xf] }
  0x83   :  { %v2377_v5 = vor.u32 %v3078_v63, %v2376_v62  ;;  %v3086_v52 = vld [vmem:[#allocation2 + $0x260] sm:$0xf0]  ;;  %v2378_v62 = vld [vmem:[#allocation2 + $0x224] sm:$0xf0]  ;;  %v2384_v63 = vld [vmem:[#allocation2 + $0x210] sm:$0xf] }
  0x85   :  { %911 = vmatpush.bf16.xpose.msrb.mxu3 %v2361_v25  ;;  %v3084_v25 = vld [vmem:[#allocation2 + $0x250] sm:$0xf0] }
  0x87   :  { %873 = vmatpush.bf16.xpose.msrb.mxu0 %v2125_v15  ;;  %v2421_v15 = vor.u32 %v3087_v7, %v2418_v8  ;;  %v2518_v7 = vld [vmem:[#allocation2 + $0x33c] sm:$0xf0]  ;;  %v2524_v8 = vld [vmem:[#allocation2 + $0x328] sm:$0xf] }
  0x88   :  { %886 = vmatpush.bf16.xpose.msrb.mxu1 %v2129_v16  ;;  %v2460_v16 = vld [vmem:[#allocation2 + $0x2b0] sm:$0xf] }
  0x89   :  { %899 = vmatpush.bf16.xpose.msrb.mxu2 %v2133_v20 }
  0x8d   :  { %912 = vmatpush.bf16.xpose.msrb.mxu3 %v2333_v43  ;;  %v2365_v43 = vor.u32 %v3073_v35, %v2362_v38 }
  0x8e   :  { %874 = vmatmul.bf16.vlgmr.msrb.gmra.mxu0 %v3398_v32 }
  0x8f   :  { %918 = vmatpush.bf16.xpose.msra.mxu0 %v2533_v21  ;;  %887 = vmatmul.bf16.vlgmr.msrb.gmra.mxu1 %v3400_v36  ;;  %v3080_v21 = vld [vmem:[#allocation2 + $0x234] sm:$0xf] }
  0x90   :  { %931 = vmatpush.bf16.xpose.msra.mxu1 %v2537_v22  ;;  %900 = vmatmul.bf16.vlgmr.msrb.gmra.mxu2 %v3402_v37  ;;  %v2390_v22 = vld [vmem:[#allocation2 + $0x24c] sm:$0xf0] }
  0x91   :  { %944 = vmatpush.bf16.xpose.msra.mxu2 %v2541_v24  ;;  %v2396_v24 = vld [vmem:[#allocation2 + $0x238] sm:$0xf]  ;;  %v2393_v28 = vor.u32 %v3080_v21, %v2390_v22  ;;  %v2490_v21 = vld [vmem:[#allocation2 + $0x304] sm:$0xf0]  ;;  %v2496_v22 = vld [vmem:[#allocation2 + $0x2f0] sm:$0xf] }
  0x92   :  { %v2397_v31 = vor.u32 %v3084_v25, %v2396_v24  ;;  %v3107_v24 = vld [vmem:[#allocation2 + $0x308] sm:$0xf0]  ;;  %v2596_v25 = vld [vmem:[#allocation4 + $0x50] sm:$0xf] }
  0x93   :  { %v2597_v29 = vor.u32 %v3133_v26, %v2596_v25  ;;  %v3423_v25 = vld [vmem:[%s3503_s2] sm:$0x3]  ;;  %v3152_v26 = vld [vmem:[#allocation4 + $0xf4] sm:$0xf] }
  0x94   :  { %913 = vmatmul.bf16.vlgmr.msrb.gmra.mxu3 %v3376_v14  ;;  %v3099_v14 = vld [vmem:[#allocation2 + $0x2c8] sm:$0xf0] }
  0x95   :  { %957 = vmatpush.bf16.xpose.msra.mxu3 %v2545_v46  ;;  %v2461_v20 = vor.u32 %v3099_v14, %v2460_v16  ;;  %v2525_v14 = vor.u32 %v3114_v9, %v2524_v8  ;;  %v3068_v8 = vld [vmem:[#allocation2 + $0x1d4] sm:$0xf]  ;;  %v2350_v9 = vld [vmem:[#allocation2 + $0x1ec] sm:$0xf0] }
  0x97   :  { %919 = vmatpush.bf16.xpose.msra.mxu0 %v2505_v40  ;;  %v3077_v40 = vld [vmem:[#allocation2 + $0x218] sm:$0xf0] }
  0x98   :  { %932 = vmatpush.bf16.xpose.msra.mxu1 %v2509_v41  ;;  %v3074_v41 = vld [vmem:[#allocation2 + $0x204] sm:$0xf]  ;;  %v2369_v46 = vor.u32 %v3077_v40, %v2368_v39  ;;  %v3089_v39 = vld [vmem:[#allocation2 + $0x27c] sm:$0xf]  ;;  %v2434_v40 = vld [vmem:[#allocation2 + $0x294] sm:$0xf0] }
  0x99   :  { %945 = vmatpush.bf16.xpose.msra.mxu2 %v2513_v42  ;;  %v2370_v42 = vld [vmem:[#allocation2 + $0x21c] sm:$0xf0]  ;;  %v2437_v45 = vor.u32 %v3089_v39, %v2434_v40  ;;  %v3151_v39 = vld [vmem:[#allocation4 + $0xe4] sm:$0xf0] }
  0x9a   :  { %v2373_v47 = vor.u32 %v3074_v41, %v2370_v42  ;;  %v2440_v41 = vld [vmem:[#allocation2 + $0x280] sm:$0xf]  ;;  %v3093_v42 = vld [vmem:[#allocation2 + $0x298] sm:$0xf0] }
  0x9b   :  { %v2732_v40 = vld [vmem:[#allocation4 + $0x160] sm:$0xf] }
  0x9d   :  { %958 = vmatpush.bf16.xpose.msra.mxu3 %v2517_v58  ;;  %v3121_v58 = vld [vmem:[#allocation2 + $0x378] sm:$0xf0] }
  0x9f   :  { %920 = vmatpush.bf16.xpose.msra.mxu0 %v2477_v53  ;;  %v3067_v53 = vld [vmem:[#allocation2 + $0x1cc] sm:$0xf] }
  0xa0   :  { %933 = vmatpush.bf16.xpose.msra.mxu1 %v2481_v54  ;;  %v2342_v54 = vld [vmem:[#allocation2 + $0x1e4] sm:$0xf0] }
  0xa1   :  { %946 = vmatpush.bf16.xpose.msra.mxu2 %v2485_v55  ;;  %v3117_v55 = vld [vmem:[#allocation2 + $0x35c] sm:$0xf] }
  0xa5   :  { %959 = vmatpush.bf16.xpose.msra.mxu3 %v2489_v6  ;;  %v3110_v6 = vld [vmem:[#allocation2 + $0x324] sm:$0xf] }
  0xa6   :  { %v2521_v16 = vor.u32 %v3110_v6, %v2518_v7 }
  0xa7   :  { %921 = vmatpush.bf16.xpose.msra.mxu0 %v2449_v1  ;;  %v2345_v1 = vor.u32 %v3067_v53, %v2342_v54  ;;  %v2572_v53 = vld [vmem:[#allocation4 + $0x20] sm:$0xf]  ;;  %v3127_v54 = vld [vmem:[#allocation4 + $0x24] sm:$0xf0] }
  0xa8   :  { %934 = vmatpush.bf16.xpose.msra.mxu1 %v2453_v2  ;;  %v2549_v2 = vor.u32 %v3117_v55, %v2546_v56  ;;  %v2413_v56 = vor.u32 %v3086_v52, %v2412_v51  ;;  %v2660_v52 = vld [vmem:[#allocation4 + $0xd0] sm:$0xf] }
  0xa9   :  { %947 = vmatpush.bf16.xpose.msra.mxu2 %v2457_v3  ;;  %v2553_v3 = vor.u32 %v3121_v58, %v2552_v57  ;;  %v2573_v57 = vor.u32 %v3127_v54, %v2572_v53  ;;  %v3149_v53 = vld [vmem:[#allocation4 + $0xd4] sm:$0xf0]  ;;  %v2724_v54 = vld [vmem:[#allocation4 + $0x150] sm:$0xf] }
  0xad   :  { %960 = vmatpush.bf16.xpose.msra.mxu3 %v2461_v20  ;;  %v3103_v20 = vld [vmem:[#allocation2 + $0x2ec] sm:$0xf] }
  0xae   :  { %v2493_v27 = vor.u32 %v3103_v20, %v2490_v21  ;;  %v2740_v20 = vld [vmem:[#allocation4 + $0x170] sm:$0xf]  ;;  %v3169_v21 = vld [vmem:[#allocation4 + $0x174] sm:$0xf0] }
  0xaf   :  { %922 = vmatpush.bf16.xpose.msra.mxu0 %v2421_v15  ;;  %v3071_v15 = vld [vmem:[#allocation2 + $0x1e8] sm:$0xf0] }
  0xb0   :  { %935 = vmatpush.bf16.xpose.msra.mxu1 %v2425_v17  ;;  %v2605_v17 = vor.u32 %v3135_v11, %v2604_v10  ;;  %v2356_v10 = vld [vmem:[#allocation2 + $0x1d8] sm:$0xf]  ;;  %v3072_v11 = vld [vmem:[#allocation2 + $0x1f0] sm:$0xf0] }
  0xb1   :  { %948 = vmatpush.bf16.xpose.msra.mxu2 %v2429_v19  ;;  %v2349_v19 = vor.u32 %v3071_v15, %v2348_v12  ;;  %v2556_v12 = vld [vmem:[#allocation4] sm:$0xf]  ;;  %v3123_v15 = vld [vmem:[#allocation4 + $0x4] sm:$0xf0] }
  0xb5   :  { %961 = vmatpush.bf16.xpose.msra.mxu3 %v2433_v34 }
  0xb7   :  { %923 = vmatpush.bf16.xpose.msra.mxu0 %v2393_v28  ;;  %v2497_v28 = vor.u32 %v3107_v24, %v2496_v22 }
  0xb8   :  { %936 = vmatpush.bf16.xpose.msra.mxu1 %v2397_v31  ;;  %v2588_v31 = vld [vmem:[#allocation4 + $0x40] sm:$0xf] }
  0xb9   :  { %949 = vmatpush.bf16.xpose.msra.mxu2 %v2401_v33  ;;  %v3131_v33 = vld [vmem:[#allocation4 + $0x44] sm:$0xf0] }
  0xba   :  { %v2589_v38 = vor.u32 %v3131_v33, %v2588_v31  ;;  %v3134_v33 = vld [vmem:[#allocation4 + $0x64] sm:$0xf] }
  0xbd   :  { %962 = vmatpush.bf16.xpose.msra.mxu3 %v2405_v48 }
  0xbf   :  { %924 = vmatpush.bf16.xpose.msra.mxu0 %v2365_v43  ;;  %v2580_v43 = vld [vmem:[#allocation4 + $0x30] sm:$0xf] }
  0xc0   :  { %937 = vmatpush.bf16.xpose.msra.mxu1 %v2369_v46  ;;  %v2441_v46 = vor.u32 %v3093_v42, %v2440_v41  ;;  %v3167_v42 = vld [vmem:[#allocation4 + $0x164] sm:$0xf0] }
  0xc1   :  { %950 = vmatpush.bf16.xpose.msra.mxu2 %v2373_v47  ;;  %v2581_v47 = vor.u32 %v3129_v44, %v2580_v43  ;;  %v3150_v43 = vld [vmem:[#allocation4 + $0xe4] sm:$0xf]  ;;  %v2670_v44 = vld [vmem:[#allocation4 + $0xe8] sm:$0xf0] }
  0xc5   :  { %963 = vmatpush.bf16.xpose.msra.mxu3 %v2377_v5 }
  0xc7   :  { %925 = vmatpush.bf16.xpose.msra.mxu0 %v2337_v60  ;;  %v3075_v60 = vld [vmem:[#allocation2 + $0x20c] sm:$0xf] }
  0xc8   :  { %938 = vmatpush.bf16.xpose.msra.mxu1 %v2341_v0  ;;  %v3079_v0 = vld [vmem:[#allocation2 + $0x228] sm:$0xf0] }
  0xc9   :  { %951 = vmatpush.bf16.xpose.msra.mxu2 %v2345_v1  ;;  %v2564_v1 = vld [vmem:[#allocation4 + $0x10] sm:$0xf]  ;;  %v2385_v5 = vor.u32 %v3079_v0, %v2384_v63  ;;  %v3130_v63 = vld [vmem:[#allocation4 + $0x44] sm:$0xf] }
  0xcb   :  { %v3412_v48 = vpop.f32.mrf.mxu0 }
  0xcc   :  { %v3414_v49 = vpop.f32.mrf.mxu1 }
  0xcd   :  { %964 = vmatpush.bf16.xpose.msra.mxu3 %v2349_v19  ;;  %v3153_v19 = vld [vmem:[#allocation4 + $0xf4] sm:$0xf0] }
  0xce   :  { %926 = vmatmul.bf16.vlgmr.msra.gmra.mxu0 %v3378_v18  ;;  %v3096_v18 = vld [vmem:[#allocation2 + $0x2b4] sm:$0xf] }
  0xcf   :  { %970 = vmatpush.bf16.xpose.msrb.mxu0 %v2549_v2  ;;  %939 = vmatmul.bf16.vlgmr.msra.gmra.mxu1 %v3374_v13  ;;  %v2462_v13 = vld [vmem:[#allocation2 + $0x2cc] sm:$0xf0]  ;;  %v3125_v2 = vld [vmem:[#allocation4 + $0x14] sm:$0xf0] }
  0xd0   :  { %983 = vmatpush.bf16.xpose.msrb.mxu1 %v2553_v3  ;;  %952 = vmatmul.bf16.vlgmr.msra.gmra.mxu2 %v3383_v23  ;;  %v3100_v23 = vld [vmem:[#allocation2 + $0x2d0] sm:$0xf0]  ;;  %v2465_v34 = vor.u32 %v3096_v18, %v2462_v13  ;;  %v2565_v6 = vor.u32 %v3125_v2, %v2564_v1  ;;  %v2557_v18 = vor.u32 %v3123_v15, %v2556_v12  ;;  %v2652_v1 = vld [vmem:[#allocation4 + $0xc0] sm:$0xf]  ;;  %v3147_v2 = vld [vmem:[#allocation4 + $0xc4] sm:$0xf0] }
  0xd1   :  { %1688 = vmatpush.bf16.xpose.msrb.mxu2 %v2613_v4  ;;  %v2469_v35 = vor.u32 %v3100_v23, %v2468_v30  ;;  %v2381_v4 = vor.u32 %v3075_v60, %v2378_v62  ;;  %v2741_v30 = vor.u32 %v3169_v21, %v2740_v20  ;;  %v234_v23 = vperm.slane %v3423_v25, 0  ;;  %v3145_v21 = vld [vmem:[#allocation4 + $0xb4] sm:$0xf0] }
  0xd3   :  { %v3416_v58 = vpop.f32.mrf.mxu2  ;;  %v825_v59 = vpop.f32.mrf.mxu0 }
  0xd4   :  { %965 = vmatmul.bf16.vlgmr.msra.gmra.mxu3 %v3398_v32  ;;  %v3082_v32 = vld [vmem:[#allocation2 + $0x244] sm:$0xf]  ;;  %v838_v61 = vpop.f32.mrf.mxu1  ;;  %v2661_v59 = vor.u32 %v3149_v53, %v2660_v52  ;;  %v3157_v53 = vld [vmem:[#allocation4 + $0x114] sm:$0xf0] }
  0xd5   :  { %v2409_v55 = vor.u32 %v3082_v32, %v2406_v50  ;;  %v2673_v32 = vor.u32 %v3150_v43, %v2670_v44  ;;  %v2598_v50 = vld [vmem:[#allocation4 + $0x58] sm:$0xf0]  ;;  %v2638_v43 = vld [vmem:[#allocation4 + $0xa8] sm:$0xf0] }
  0xd7   :  { %971 = vmatpush.bf16.xpose.msrb.mxu0 %v2521_v16  ;;  %v3418_v3 = vpop.f32.mrf.mxu3  ;;  %v2676_v16 = vld [vmem:[#allocation4 + $0xf0] sm:$0xf] }
  0xd8   :  { %984 = vmatpush.bf16.xpose.msrb.mxu1 %v2525_v14  ;;  %v3136_v14 = vld [vmem:[#allocation4 + $0x74] sm:$0xf]  ;;  %v2677_v13 = vor.u32 %v3153_v19, %v2676_v16  ;;  %v2644_v16 = vld [vmem:[#allocation4 + $0xb0] sm:$0xf] }
  0xd9   :  { %1689 = vmatpush.bf16.xpose.msrb.mxu2 %v2605_v17  ;;  %v2614_v17 = vld [vmem:[#allocation4 + $0x78] sm:$0xf0] }
  0xda   :  { %v2617_v22 = vor.u32 %v3136_v14, %v2614_v17  ;;  %v3128_v14 = vld [vmem:[#allocation4 + $0x34] sm:$0xf]  ;;  %v2582_v17 = vld [vmem:[#allocation4 + $0x38] sm:$0xf0] }
  0xdb   :  { %v851_v7 = vpop.f32.mrf.mxu2 }
  0xdc   :  { %1701 = vmatpush.bf16.xpose.msrb.mxu3 %v2617_v22  ;;  %v3146_v7 = vld [vmem:[#allocation4 + $0xc4] sm:$0xf]  ;;  %v2708_v22 = vld [vmem:[#allocation4 + $0x130] sm:$0xf] }
  0xdf   :  { %972 = vmatpush.bf16.xpose.msrb.mxu0 %v2493_v27  ;;  %v864_v24 = vpop.f32.mrf.mxu3  ;;  %v2678_v27 = vld [vmem:[#allocation4 + $0xf8] sm:$0xf0] }
  0xe0   :  { %985 = vmatpush.bf16.xpose.msrb.mxu1 %v2497_v28  ;;  %v2353_v28 = vor.u32 %v3068_v8, %v2350_v9  ;;  %v2681_v31 = vor.u32 %v3152_v26, %v2678_v27  ;;  %v2654_v8 = vld [vmem:[#allocation4 + $0xc8] sm:$0xf0]  ;;  %v3161_v24 = vld [vmem:[#allocation4 + $0x134] sm:$0xf0]  ;;  %v2585_v26 = vor.u32 %v3128_v14, %v2582_v17  ;;  %v3166_v17 = vld [vmem:[#allocation4 + $0x164] sm:$0xf] }
  0xe1   :  { %1690 = vmatpush.bf16.xpose.msrb.mxu2 %v2597_v29  ;;  %v2357_v29 = vor.u32 %v3072_v11, %v2356_v10  ;;  %v2653_v10 = vor.u32 %v3147_v2, %v2652_v1  ;;  %v2657_v11 = vor.u32 %v3146_v7, %v2654_v8  ;;  %v2804_v1 = vld [vmem:[#allocation4 + $0x1f0] sm:$0xf]  ;;  %v3185_v2 = vld [vmem:[#allocation4 + $0x1f4] sm:$0xf0]  ;;  %v3138_v7 = vld [vmem:[#allocation4 + $0x84] sm:$0xf] }
  0xe2   :  { %v2622_v8 = vld [vmem:[#allocation4 + $0x88] sm:$0xf0] }
  0xe7   :  { %973 = vmatpush.bf16.xpose.msrb.mxu0 %v2465_v34  ;;  %v2606_v34 = vld [vmem:[#allocation4 + $0x68] sm:$0xf0] }
  0xe8   :  { %986 = vmatpush.bf16.xpose.msrb.mxu1 %v2469_v35  ;;  %v824_v35 = vadd.f32 %v3412_v48, %v234_v23  ;;  %v2609_v41 = vor.u32 %v3134_v33, %v2606_v34  ;;  %v3132_v48 = vld [vmem:[#allocation4 + $0x54] sm:$0xf]  ;;  %v3126_v33 = vld [vmem:[#allocation4 + $0x24] sm:$0xf]  ;;  %v2574_v34 = vld [vmem:[#allocation4 + $0x28] sm:$0xf0] }
  0xe9   :  { %1691 = vmatpush.bf16.xpose.msrb.mxu2 %v2589_v38  ;;  %v2668_v38 = vld [vmem:[#allocation4 + $0xe0] sm:$0xf] }
  0xea   :  { %1702 = vmatpush.bf16.xpose.msrb.mxu3 %v2609_v41  ;;  %v3159_v41 = vld [vmem:[#allocation4 + $0x124] sm:$0xf0] }
  0xef   :  { %974 = vmatpush.bf16.xpose.msrb.mxu0 %v2437_v45  ;;  %v2669_v45 = vor.u32 %v3151_v39, %v2668_v38  ;;  %v3143_v38 = vld [vmem:[#allocation4 + $0xa4] sm:$0xf0]  ;;  %v2700_v39 = vld [vmem:[#allocation4 + $0x120] sm:$0xf] }
  0xf0   :  { %987 = vmatpush.bf16.xpose.msrb.mxu1 %v2441_v46  ;;  %v837_v46 = vadd.f32 %v3414_v49, %v824_v35  ;;  %v2662_v49 = vld [vmem:[#allocation4 + $0xd8] sm:$0xf0]  ;;  %v2636_v35 = vld [vmem:[#allocation4 + $0xa0] sm:$0xf] }
  0xf1   :  { %1692 = vmatpush.bf16.xpose.msrb.mxu2 %v2581_v47  ;;  %v2733_v47 = vor.u32 %v3167_v42, %v2732_v40  ;;  %v2577_v40 = vor.u32 %v3126_v33, %v2574_v34  ;;  %v3142_v42 = vld [vmem:[#allocation4 + $0xa4] sm:$0xf]  ;;  %v2637_v44 = vor.u32 %v3143_v38, %v2636_v35  ;;  %v2788_v33 = vld [vmem:[#allocation4 + $0x1d0] sm:$0xf]  ;;  %v3181_v34 = vld [vmem:[#allocation4 + $0x1d4] sm:$0xf0] }
  0xf2   :  { %v850_v51 = vadd.f32 %v3416_v58, %v837_v46  ;;  %v2590_v58 = vld [vmem:[#allocation4 + $0x48] sm:$0xf0]  ;;  %v2641_v46 = vor.u32 %v3142_v42, %v2638_v43  ;;  %v2790_v42 = vld [vmem:[#allocation4 + $0x1d8] sm:$0xf0]  ;;  %v2789_v43 = vor.u32 %v3181_v34, %v2788_v33  ;;  %v3172_v34 = vld [vmem:[#allocation4 + $0x194] sm:$0xf] }
  0xf7   :  { %975 = vmatpush.bf16.xpose.msrb.mxu0 %v2409_v55  ;;  %v2601_v55 = vor.u32 %v3132_v48, %v2598_v50  ;;  %v2628_v48 = vld [vmem:[#allocation4 + $0x90] sm:$0xf]  ;;  %v3141_v50 = vld [vmem:[#allocation4 + $0x94] sm:$0xf0] }
  0xf8   :  { %988 = vmatpush.bf16.xpose.msrb.mxu1 %v2413_v56  ;;  %v3165_v56 = vld [vmem:[#allocation4 + $0x154] sm:$0xf0] }
  0xf9   :  { %1693 = vmatpush.bf16.xpose.msrb.mxu2 %v2573_v57  ;;  %v3148_v57 = vld [vmem:[#allocation4 + $0xd4] sm:$0xf]  ;;  %1703 = vmatpush.bf16.xpose.msrb.mxu3 %v2601_v55  ;;  %v2725_v60 = vor.u32 %v3165_v56, %v2724_v54  ;;  %v2630_v55 = vld [vmem:[#allocation4 + $0x98] sm:$0xf0]  ;;  %v2629_v56 = vor.u32 %v3141_v50, %v2628_v48  ;;  %v3179_v48 = vld [vmem:[#allocation4 + $0x1c4] sm:$0xf0] }
  0xfa   :  { %v3140_v54 = vld [vmem:[#allocation4 + $0x94] sm:$0xf] }
  0xff   :  { %976 = vmatpush.bf16.xpose.msrb.mxu0 %v2381_v4  ;;  %v2716_v4 = vld [vmem:[#allocation4 + $0x140] sm:$0xf] }
 0x100   :  { %989 = vmatpush.bf16.xpose.msrb.mxu1 %v2385_v5  ;;  %v2593_v5 = vor.u32 %v3130_v63, %v2590_v58  ;;  %v3168_v58 = vld [vmem:[#allocation4 + $0x174] sm:$0xf] }
 0x101   :  { %1694 = vmatpush.bf16.xpose.msrb.mxu2 %v2565_v6  ;;  %v3163_v6 = vld [vmem:[#allocation4 + $0x144] sm:$0xf0] }
 0x102   :  { %1704 = vmatpush.bf16.xpose.msrb.mxu3 %v2593_v5 }
 0x107   :  { %977 = vmatpush.bf16.xpose.msrb.mxu0 %v2353_v28  ;;  %v3144_v28 = vld [vmem:[#allocation4 + $0xb4] sm:$0xf] }
 0x108   :  { %990 = vmatpush.bf16.xpose.msrb.mxu1 %v2357_v29  ;;  %v2646_v29 = vld [vmem:[#allocation4 + $0xb8] sm:$0xf0] }
 0x109   :  { %1695 = vmatpush.bf16.xpose.msrb.mxu2 %v2557_v18  ;;  %v2649_v23 = vor.u32 %v3144_v28, %v2646_v29  ;;  %v2798_v28 = vld [vmem:[#allocation4 + $0x1e8] sm:$0xf0] }
 0x10a   :  { %1705 = vmatpush.bf16.xpose.msrb.mxu3 %v2585_v26  ;;  %v3199_v26 = vld [vmem:[#allocation4 + $0x264] sm:$0xf0] }
 0x10b   :  { %v875_v61 = vpop.f32.mrf.mxu0 }
 0x10c   :  { %v888_v62 = vpop.f32.mrf.mxu1 }
 0x10e   :  { %978 = vmatmul.bf16.vlgmr.msrb.gmra.mxu0 %v3400_v36  ;;  %v863_v36 = vadd.f32 %v3418_v3, %v850_v51  ;;  %v2717_v3 = vor.u32 %v3163_v6, %v2716_v4  ;;  %v2692_v51 = vld [vmem:[#allocation4 + $0x110] sm:$0xf]  ;;  %v3201_v6 = vld [vmem:[#allocation4 + $0x274] sm:$0xf0] }
 0x10f   :  { %1714 = vmatpush.bf16.xpose.msra.mxu0 %v2677_v13  ;;  %991 = vmatmul.bf16.vlgmr.msrb.gmra.mxu1 %v3402_v37  ;;  %v2665_v37 = vor.u32 %v3148_v57, %v2662_v49  ;;  %v2645_v13 = vor.u32 %v3145_v21, %v2644_v16  ;;  %v2693_v57 = vor.u32 %v3157_v53, %v2692_v51  ;;  %v2868_v4 = vld [vmem:[#allocation4 + $0x270] sm:$0xf]  ;;  %v3183_v21 = vld [vmem:[#allocation4 + $0x1e4] sm:$0xf0]  ;;  %v2844_v53 = vld [vmem:[#allocation4 + $0x240] sm:$0xf] }
 0x110   :  { %1727 = vmatpush.bf16.xpose.msra.mxu1 %v2681_v31  ;;  %v876_v0 = vadd.f32 %v875_v61, %v863_v36  ;;  %v2633_v49 = vor.u32 %v3140_v54, %v2630_v55  ;;  %v2684_v36 = vld [vmem:[#allocation4 + $0x100] sm:$0xf]  ;;  %v2558_v61 = vld [vmem:[#allocation4 + $0x8] sm:$0xf0]  ;;  %v2625_v16 = vor.u32 %v3138_v7, %v2622_v8  ;;  %v3195_v54 = vld [vmem:[#allocation4 + $0x244] sm:$0xf0] }
 0x111   :  { %1740 = vmatpush.bf16.xpose.msra.mxu2 %v2741_v30  ;;  %v2709_v30 = vor.u32 %v3161_v24, %v2708_v22  ;;  %v2860_v24 = vld [vmem:[#allocation4 + $0x260] sm:$0xf] }
 0x112   :  { %v889_v9 = vadd.f32 %v888_v62, %v876_v0  ;;  %1706 = vmatpush.bf16.xpose.msrb.mxu3 %v2577_v40  ;;  %v3155_v62 = vld [vmem:[#allocation4 + $0x104] sm:$0xf0]  ;;  %v2742_v0 = vld [vmem:[#allocation4 + $0x178] sm:$0xf0]  ;;  %v3197_v40 = vld [vmem:[#allocation4 + $0x254] sm:$0xf0] }
 0x113   :  { %v901_v12 = vpop.f32.mrf.mxu2  ;;  %v877_v19 = vpop.f32.mrf.mxu0  ;;  %v2745_v5 = vor.u32 %v3168_v58, %v2742_v0 }
 0x114   :  { %v902_v15 = vadd.f32 %v901_v12, %v889_v9  ;;  %v890_v20 = vpop.f32.mrf.mxu1  ;;  %v2805_v12 = vor.u32 %v3185_v2, %v2804_v1  ;;  %v2734_v19 = vld [vmem:[#allocation4 + $0x168] sm:$0xf0]  ;;  %v2836_v1 = vld [vmem:[#allocation4 + $0x230] sm:$0xf]  ;;  %v3193_v2 = vld [vmem:[#allocation4 + $0x234] sm:$0xf0] }
 0x115   :  { %v2796_v20 = vld [vmem:[#allocation4 + $0x1e0] sm:$0xf]  ;;  %v2737_v22 = vor.u32 %v3166_v17, %v2734_v19  ;;  %v2837_v8 = vor.u32 %v3193_v2, %v2836_v1 }
 0x116   :  { %v996_v27 = vmax.f32 %v902_v15, 0.0  ;;  %v2869_v15 = vor.u32 %v3201_v6, %v2868_v4  ;;  %v2797_v29 = vor.u32 %v3183_v21, %v2796_v20  ;;  %v2774_v6 = vld [vmem:[#allocation4 + $0x1b8] sm:$0xf0]  ;;  %v3174_v20 = vld [vmem:[#allocation4 + $0x1a4] sm:$0xf] }
 0x117   :  { %1715 = vmatpush.bf16.xpose.msra.mxu0 %v2669_v45  ;;  %v2701_v45 = vor.u32 %v3159_v41, %v2700_v39  ;;  %v3437_v38 = vpop.f32.mrf.mxu3  ;;  %v2852_v39 = vld [vmem:[#allocation4 + $0x250] sm:$0xf]  ;;  %v3180_v41 = vld [vmem:[#allocation4 + $0x1d4] sm:$0xf]  ;;  %v2766_v21 = vld [vmem:[#allocation4 + $0x1a8] sm:$0xf0] }
 0x118   :  { %1728 = vmatpush.bf16.xpose.msra.mxu1 %v2673_v32  ;;  %v3432_v18 = vpack.c.bf16 %v996_v27, %v996_v27  ;;  %v2566_v32 = vld [vmem:[#allocation4 + $0x18] sm:$0xf0]  ;;  %v3182_v27 = vld [vmem:[#allocation4 + $0x1e4] sm:$0xf] }
 0x119   :  { %1741 = vmatpush.bf16.xpose.msra.mxu2 %v2733_v47  ;;  %v3124_v47 = vld [vmem:[#allocation4 + $0x14] sm:$0xf] }
 0x11a   :  { %1696 = vmatmul.bf16.vlgmr.msrb.gmra.mxu2 %v3432_v18  ;;  %v2569_v52 = vor.u32 %v3124_v47, %v2566_v32  ;;  %v2718_v47 = vld [vmem:[#allocation4 + $0x148] sm:$0xf0]  ;;  %v2780_v32 = vld [vmem:[#allocation4 + $0x1c0] sm:$0xf] }
 0x11b   :  { %v903_v31 = vpop.f32.mrf.mxu2 }
 0x11c   :  { %1707 = vmatpush.bf16.xpose.msrb.mxu3 %v2569_v52  ;;  %v2726_v31 = vld [vmem:[#allocation4 + $0x158] sm:$0xf0] }
 0x11f   :  { %1716 = vmatpush.bf16.xpose.msra.mxu0 %v2661_v59  ;;  %v2620_v59 = vld [vmem:[#allocation4 + $0x80] sm:$0xf]  ;;  %v916_v55 = vpop.f32.mrf.mxu3 }
 0x120   :  { %1729 = vmatpush.bf16.xpose.msra.mxu1 %v2665_v37  ;;  %v3122_v37 = vld [vmem:[#allocation4 + $0x4] sm:$0xf] }
 0x121   :  { %1742 = vmatpush.bf16.xpose.msra.mxu2 %v2725_v60  ;;  %v3139_v60 = vld [vmem:[#allocation4 + $0x84] sm:$0xf0]  ;;  %v2561_v63 = vor.u32 %v3122_v37, %v2558_v61  ;;  %v2710_v37 = vld [vmem:[#allocation4 + $0x138] sm:$0xf0]  ;;  %v2772_v61 = vld [vmem:[#allocation4 + $0x1b0] sm:$0xf] }
 0x122   :  { %v2621_v9 = vor.u32 %v3139_v60, %v2620_v59  ;;  %v2845_v59 = vor.u32 %v3195_v54, %v2844_v53  ;;  %v2996_v53 = vld [vmem:[#allocation4 + $0x370] sm:$0xf]  ;;  %v3233_v54 = vld [vmem:[#allocation4 + $0x374] sm:$0xf0]  ;;  %v3170_v55 = vld [vmem:[#allocation4 + $0x184] sm:$0xf] }
 0x124   :  { %1708 = vmatpush.bf16.xpose.msrb.mxu3 %v2561_v63 }
 0x127   :  { %1717 = vmatpush.bf16.xpose.msra.mxu0 %v2653_v10  ;;  %v3184_v10 = vld [vmem:[#allocation4 + $0x1f4] sm:$0xf] }
 0x128   :  { %1730 = vmatpush.bf16.xpose.msra.mxu1 %v2657_v11  ;;  %v2685_v11 = vor.u32 %v3155_v62, %v2684_v36  ;;  %v3160_v36 = vld [vmem:[#allocation4 + $0x134] sm:$0xf]  ;;  %v3177_v62 = vld [vmem:[#allocation4 + $0x1b4] sm:$0xf0] }
 0x129   :  { %1743 = vmatpush.bf16.xpose.msra.mxu2 %v2717_v3  ;;  %v2806_v3 = vld [vmem:[#allocation4 + $0x1f8] sm:$0xf0]  ;;  %v2713_v58 = vor.u32 %v3160_v36, %v2710_v37  ;;  %v2773_v7 = vor.u32 %v3177_v62, %v2772_v61  ;;  %v2997_v36 = vor.u32 %v3233_v54, %v2996_v53  ;;  %v2924_v62 = vld [vmem:[#allocation4 + $0x2e0] sm:$0xf]  ;;  %v3196_v53 = vld [vmem:[#allocation4 + $0x254] sm:$0xf] }
 0x12a   :  { %v2809_v14 = vor.u32 %v3184_v10, %v2806_v3  ;;  %v3158_v10 = vld [vmem:[#allocation4 + $0x124] sm:$0xf]  ;;  %v2702_v3 = vld [vmem:[#allocation4 + $0x128] sm:$0xf0] }
 0x12c   :  { %1753 = vmatpush.bf16.xpose.msra.mxu3 %v2745_v5  ;;  %v3176_v5 = vld [vmem:[#allocation4 + $0x1b4] sm:$0xf] }
 0x12f   :  { %1718 = vmatpush.bf16.xpose.msra.mxu0 %v2645_v13  ;;  %v2861_v13 = vor.u32 %v3199_v26, %v2860_v24  ;;  %v2769_v26 = vor.u32 %v3174_v20, %v2766_v21  ;;  %v3200_v20 = vld [vmem:[#allocation4 + $0x274] sm:$0xf] }
 0x130   :  { %1731 = vmatpush.bf16.xpose.msra.mxu1 %v2649_v23  ;;  %v3164_v23 = vld [vmem:[#allocation4 + $0x154] sm:$0xf] }
 0x131   :  { %1744 = vmatpush.bf16.xpose.msra.mxu2 %v2709_v30  ;;  %v2801_v30 = vor.u32 %v3182_v27, %v2798_v28  ;;  %v2729_v35 = vor.u32 %v3164_v23, %v2726_v31  ;;  %v3156_v27 = vld [vmem:[#allocation4 + $0x114] sm:$0xf]  ;;  %v2694_v28 = vld [vmem:[#allocation4 + $0x118] sm:$0xf0]  ;;  %v2820_v23 = vld [vmem:[#allocation4 + $0x210] sm:$0xf] }
 0x132   :  { %v3189_v31 = vld [vmem:[#allocation4 + $0x214] sm:$0xf0] }
 0x134   :  { %1754 = vmatpush.bf16.xpose.msra.mxu3 %v2737_v22 }
 0x137   :  { %1719 = vmatpush.bf16.xpose.msra.mxu0 %v2637_v44  ;;  %v2853_v44 = vor.u32 %v3197_v40, %v2852_v39  ;;  %v2821_v40 = vor.u32 %v3189_v31, %v2820_v23  ;;  %v2900_v31 = vld [vmem:[#allocation4 + $0x2b0] sm:$0xf] }
 0x138   :  { %1732 = vmatpush.bf16.xpose.msra.mxu1 %v2641_v46  ;;  %v3162_v46 = vld [vmem:[#allocation4 + $0x144] sm:$0xf] }
 0x139   :  { %1745 = vmatpush.bf16.xpose.msra.mxu2 %v2701_v45  ;;  %v2793_v45 = vor.u32 %v3180_v41, %v2790_v42  ;;  %v2721_v51 = vor.u32 %v3162_v46, %v2718_v47  ;;  %v2748_v42 = vld [vmem:[#allocation4 + $0x180] sm:$0xf]  ;;  %v3187_v47 = vld [vmem:[#allocation4 + $0x204] sm:$0xf0] }
 0x13a   :  { %v2812_v46 = vld [vmem:[#allocation4 + $0x200] sm:$0xf] }
 0x13c   :  { %1755 = vmatpush.bf16.xpose.msra.mxu3 %v2729_v35  ;;  %v2758_v35 = vld [vmem:[#allocation4 + $0x198] sm:$0xf0] }
 0x13d   :  { %v2761_v41 = vor.u32 %v3172_v34, %v2758_v35  ;;  %v2964_v34 = vld [vmem:[#allocation4 + $0x330] sm:$0xf]  ;;  %v3225_v35 = vld [vmem:[#allocation4 + $0x334] sm:$0xf0] }
 0x13f   :  { %1720 = vmatpush.bf16.xpose.msra.mxu0 %v2629_v56  ;;  %v3178_v56 = vld [vmem:[#allocation4 + $0x1c4] sm:$0xf] }
 0x140   :  { %1733 = vmatpush.bf16.xpose.msra.mxu1 %v2633_v49  ;;  %v2781_v49 = vor.u32 %v3179_v48, %v2780_v32  ;;  %v2932_v48 = vld [vmem:[#allocation4 + $0x2f0] sm:$0xf] }
 0x141   :  { %1746 = vmatpush.bf16.xpose.msra.mxu2 %v2693_v57  ;;  %v2782_v57 = vld [vmem:[#allocation4 + $0x1c8] sm:$0xf0] }
 0x142   :  { %v2785_v60 = vor.u32 %v3178_v56, %v2782_v57  ;;  %v2750_v56 = vld [vmem:[#allocation4 + $0x188] sm:$0xf0] }
 0x143   :  { %v2753_v37 = vor.u32 %v3170_v55, %v2750_v56  ;;  %v2854_v55 = vld [vmem:[#allocation4 + $0x258] sm:$0xf0]  ;;  %v3212_v56 = vld [vmem:[#allocation4 + $0x2d4] sm:$0xf] }
 0x144   :  { %1756 = vmatpush.bf16.xpose.msra.mxu3 %v2721_v51  ;;  %v3217_v51 = vld [vmem:[#allocation4 + $0x2f4] sm:$0xf0] }
 0x147   :  { %1721 = vmatpush.bf16.xpose.msra.mxu0 %v2621_v9  ;;  %v2777_v9 = vor.u32 %v3176_v5, %v2774_v6  ;;  %v3213_v6 = vld [vmem:[#allocation4 + $0x2d4] sm:$0xf0] }
 0x148   :  { %1734 = vmatpush.bf16.xpose.msra.mxu1 %v2625_v16  ;;  %v2828_v16 = vld [vmem:[#allocation4 + $0x220] sm:$0xf] }
 0x149   :  { %1747 = vmatpush.bf16.xpose.msra.mxu2 %v2685_v11  ;;  %v2764_v11 = vld [vmem:[#allocation4 + $0x1a0] sm:$0xf] }
 0x14b   :  { %v3439_v50 = vpop.f32.mrf.mxu0 }
 0x14c   :  { %v3441_v52 = vpop.f32.mrf.mxu1  ;;  %1757 = vmatpush.bf16.xpose.msra.mxu3 %v2713_v58  ;;  %v2988_v58 = vld [vmem:[#allocation4 + $0x360] sm:$0xf] }
 0x14e   :  { %1722 = vmatmul.bf16.vlgmr.msra.gmra.mxu0 %v3432_v18 }
 0x14f   :  { %1766 = vmatpush.bf16.xpose.msrb.mxu0 %v2805_v12  ;;  %v3175_v12 = vld [vmem:[#allocation4 + $0x1a4] sm:$0xf0] }
 0x150   :  { %1779 = vmatpush.bf16.xpose.msrb.mxu1 %v2809_v14  ;;  %1748 = vmatmul.bf16.vlgmr.msra.gmra.mxu2 %v3432_v18  ;;  %v3191_v14 = vld [vmem:[#allocation4 + $0x224] sm:$0xf0]  ;;  %v2765_v22 = vor.u32 %v3175_v12, %v2764_v11 }
 0x151   :  { %1792 = vmatpush.bf16.xpose.msrb.mxu2 %v2869_v15  ;;  %v2705_v15 = vor.u32 %v3158_v10, %v2702_v3  ;;  %v2829_v24 = vor.u32 %v3191_v14, %v2828_v16  ;;  %v3211_v16 = vld [vmem:[#allocation4 + $0x2c4] sm:$0xf0] }
 0x153   :  { %v929_v63 = vpop.f32.mrf.mxu0  ;;  %v3443_v4 = vpop.f32.mrf.mxu2 }
 0x154   :  { %v942_v0 = vpop.f32.mrf.mxu1  ;;  %1758 = vmatpush.bf16.xpose.msra.mxu3 %v2705_v15  ;;  %v3215_v63 = vld [vmem:[#allocation4 + $0x2e4] sm:$0xf0]  ;;  %v2908_v15 = vld [vmem:[#allocation4 + $0x2c0] sm:$0xf] }
 0x155   :  { %v3231_v0 = vld [vmem:[#allocation4 + $0x364] sm:$0xf0]  ;;  %v2925_v2 = vor.u32 %v3215_v63, %v2924_v62  ;;  %v3221_v62 = vld [vmem:[#allocation4 + $0x314] sm:$0xf0]  ;;  %v3194_v63 = vld [vmem:[#allocation4 + $0x244] sm:$0xf] }
 0x156   :  { %v2989_v5 = vor.u32 %v3231_v0, %v2988_v58  ;;  %v2846_v0 = vld [vmem:[#allocation4 + $0x248] sm:$0xf0] }
 0x157   :  { %1767 = vmatpush.bf16.xpose.msrb.mxu0 %v2797_v29  ;;  %v3445_v17 = vpop.f32.mrf.mxu3  ;;  %v2756_v29 = vld [vmem:[#allocation4 + $0x190] sm:$0xf] }
 0x158   :  { %1780 = vmatpush.bf16.xpose.msrb.mxu1 %v2801_v30  ;;  %v2697_v30 = vor.u32 %v3156_v27, %v2694_v28  ;;  %v2934_v27 = vld [vmem:[#allocation4 + $0x2f8] sm:$0xf0] }
 0x159   :  { %1793 = vmatpush.bf16.xpose.msrb.mxu2 %v2861_v13  ;;  %v3173_v13 = vld [vmem:[#allocation4 + $0x194] sm:$0xf0] }
 0x15a   :  { %v2757_v39 = vor.u32 %v3173_v13, %v2756_v29 }
 0x15b   :  { %v955_v19 = vpop.f32.mrf.mxu2 }
 0x15c   :  { %1759 = vmatpush.bf16.xpose.msra.mxu3 %v2697_v30  ;;  %v3227_v19 = vld [vmem:[#allocation4 + $0x344] sm:$0xf0] }
 0x15f   :  { %1768 = vmatpush.bf16.xpose.msrb.mxu0 %v2789_v43  ;;  %v968_v33 = vpop.f32.mrf.mxu3  ;;  %v3154_v43 = vld [vmem:[#allocation4 + $0x104] sm:$0xf] }
 0x160   :  { %1781 = vmatpush.bf16.xpose.msrb.mxu1 %v2793_v45  ;;  %v3171_v45 = vld [vmem:[#allocation4 + $0x184] sm:$0xf0]  ;;  %v3209_v33 = vld [vmem:[#allocation4 + $0x2b4] sm:$0xf0] }
 0x161   :  { %1794 = vmatpush.bf16.xpose.msrb.mxu2 %v2853_v44  ;;  %v2686_v44 = vld [vmem:[#allocation4 + $0x108] sm:$0xf0]  ;;  %v2749_v57 = vor.u32 %v3171_v45, %v2748_v42  ;;  %v3214_v42 = vld [vmem:[#allocation4 + $0x2e4] sm:$0xf] }
 0x162   :  { %v2689_v32 = vor.u32 %v3154_v43, %v2686_v44  ;;  %v2926_v43 = vld [vmem:[#allocation4 + $0x2e8] sm:$0xf0]  ;;  %v2965_v44 = vor.u32 %v3225_v35, %v2964_v34  ;;  %v3202_v35 = vld [vmem:[#allocation4 + $0x284] sm:$0xf] }
 0x163   :  { %v2814_v34 = vld [vmem:[#allocation4 + $0x208] sm:$0xf0] }
 0x164   :  { %1760 = vmatpush.bf16.xpose.msra.mxu3 %v2689_v32  ;;  %v3207_v32 = vld [vmem:[#allocation4 + $0x2a4] sm:$0xf0] }
 0x167   :  { %1769 = vmatpush.bf16.xpose.msrb.mxu0 %v2781_v49  ;;  %v235_v49 = vperm.slane %v3423_v25, 1 }
 0x168   :  { %1782 = vmatpush.bf16.xpose.msrb.mxu1 %v2785_v60  ;;  %v2933_v60 = vor.u32 %v3217_v51, %v2932_v48  ;;  %v2956_v48 = vld [vmem:[#allocation4 + $0x320] sm:$0xf]  ;;  %v3223_v51 = vld [vmem:[#allocation4 + $0x324] sm:$0xf0] }
 0x169   :  { %1795 = vmatpush.bf16.xpose.msrb.mxu2 %v2845_v59  ;;  %v2813_v59 = vor.u32 %v3187_v47, %v2812_v46  ;;  %v915_v61 = vadd.f32 %v3437_v38, %v235_v49  ;;  %v2916_v38 = vld [vmem:[#allocation4 + $0x2d0] sm:$0xf]  ;;  %v2929_v46 = vor.u32 %v3214_v42, %v2926_v43  ;;  %v2892_v47 = vld [vmem:[#allocation4 + $0x2a0] sm:$0xf]  ;;  %v2957_v49 = vor.u32 %v3223_v51, %v2956_v48  ;;  %v3228_v51 = vld [vmem:[#allocation4 + $0x354] sm:$0xf] }
 0x16a   :  { %v2917_v10 = vor.u32 %v3213_v6, %v2916_v38  ;;  %v2893_v54 = vor.u32 %v3207_v32, %v2892_v47  ;;  %v2849_v38 = vor.u32 %v3194_v63, %v2846_v0  ;;  %v2990_v47 = vld [vmem:[#allocation4 + $0x368] sm:$0xf0]  ;;  %v2950_v63 = vld [vmem:[#allocation4 + $0x318] sm:$0xf0] }
 0x16b   :  { %v928_v1 = vadd.f32 %v3439_v50, %v915_v61  ;;  %v2948_v61 = vld [vmem:[#allocation4 + $0x310] sm:$0xf] }
 0x16d   :  { %v941_v25 = vadd.f32 %v3441_v52, %v928_v1  ;;  %v2972_v52 = vld [vmem:[#allocation4 + $0x340] sm:$0xf]  ;;  %v3210_v1 = vld [vmem:[#allocation4 + $0x2c4] sm:$0xf] }
 0x16f   :  { %1770 = vmatpush.bf16.xpose.msrb.mxu0 %v2773_v7  ;;  %v2980_v7 = vld [vmem:[#allocation4 + $0x350] sm:$0xf] }
 0x170   :  { %1783 = vmatpush.bf16.xpose.msrb.mxu1 %v2777_v9  ;;  %v954_v9 = vadd.f32 %v3443_v4, %v941_v25  ;;  %v2973_v4 = vor.u32 %v3227_v19, %v2972_v52 }
 0x171   :  { %1796 = vmatpush.bf16.xpose.msrb.mxu2 %v2837_v8  ;;  %v3229_v8 = vld [vmem:[#allocation4 + $0x354] sm:$0xf0] }
 0x172   :  { %v2981_v3 = vor.u32 %v3229_v8, %v2980_v7  ;;  %v967_v50 = vadd.f32 %v3445_v17, %v954_v9  ;;  %v2876_v7 = vld [vmem:[#allocation4 + $0x280] sm:$0xf]  ;;  %v3203_v8 = vld [vmem:[#allocation4 + $0x284] sm:$0xf0] }
 0x173   :  { %v2940_v9 = vld [vmem:[#allocation4 + $0x300] sm:$0xf] }
 0x177   :  { %1771 = vmatpush.bf16.xpose.msrb.mxu0 %v2765_v22  ;;  %v2909_v22 = vor.u32 %v3211_v16, %v2908_v15  ;;  %v2902_v15 = vld [vmem:[#allocation4 + $0x2b8] sm:$0xf0] }
 0x178   :  { %1784 = vmatpush.bf16.xpose.msrb.mxu1 %v2769_v26  ;;  %v3216_v26 = vld [vmem:[#allocation4 + $0x2f4] sm:$0xf] }
 0x179   :  { %1797 = vmatpush.bf16.xpose.msrb.mxu2 %v2829_v24  ;;  %v2870_v24 = vld [vmem:[#allocation4 + $0x278] sm:$0xf0]  ;;  %v2937_v13 = vor.u32 %v3216_v26, %v2934_v27 }
 0x17a   :  { %v2873_v29 = vor.u32 %v3200_v20, %v2870_v24  ;;  %v3190_v20 = vld [vmem:[#allocation4 + $0x224] sm:$0xf]  ;;  %v2894_v24 = vld [vmem:[#allocation4 + $0x2a8] sm:$0xf0] }
 0x17f   :  { %1772 = vmatpush.bf16.xpose.msrb.mxu0 %v2757_v39  ;;  %v3198_v39 = vld [vmem:[#allocation4 + $0x264] sm:$0xf] }
 0x180   :  { %1785 = vmatpush.bf16.xpose.msrb.mxu1 %v2761_v41  ;;  %v2862_v41 = vld [vmem:[#allocation4 + $0x268] sm:$0xf0] }
 0x181   :  { %1798 = vmatpush.bf16.xpose.msrb.mxu2 %v2821_v40  ;;  %v2901_v40 = vor.u32 %v3209_v33, %v2900_v31  ;;  %v2865_v45 = vor.u32 %v3198_v39, %v2862_v41  ;;  %v3186_v33 = vld [vmem:[#allocation4 + $0x204] sm:$0xf]  ;;  %v2878_v39 = vld [vmem:[#allocation4 + $0x288] sm:$0xf0]  ;;  %v2998_v41 = vld [vmem:[#allocation4 + $0x378] sm:$0xf0] }
 0x182   :  { %v2817_v42 = vor.u32 %v3186_v33, %v2814_v34  ;;  %v2881_v43 = vor.u32 %v3202_v35, %v2878_v39 }
 0x187   :  { %1773 = vmatpush.bf16.xpose.msrb.mxu0 %v2749_v57  ;;  %v2918_v57 = vld [vmem:[#allocation4 + $0x2d8] sm:$0xf0] }
 0x188   :  { %1786 = vmatpush.bf16.xpose.msrb.mxu1 %v2753_v37  ;;  %v3205_v37 = vld [vmem:[#allocation4 + $0x294] sm:$0xf0] }
 0x189   :  { %1799 = vmatpush.bf16.xpose.msrb.mxu2 %v2813_v59  ;;  %v2857_v59 = vor.u32 %v3196_v53, %v2854_v55  ;;  %v2982_v53 = vld [vmem:[#allocation4 + $0x358] sm:$0xf0]  ;;  %v3226_v55 = vld [vmem:[#allocation4 + $0x344] sm:$0xf] }
 0x18b   :  { %v979_v11 = vpop.f32.mrf.mxu0 }
 0x18c   :  { %v992_v12 = vpop.f32.mrf.mxu1  ;;  %v980_v14 = vadd.f32 %v979_v11, %v967_v50  ;;  %v2877_v50 = vor.u32 %v3203_v8, %v2876_v7  ;;  %v2838_v11 = vld [vmem:[#allocation4 + $0x238] sm:$0xf0] }
 0x18d   :  { %v3474_v7 = vld [vmem:[%s3505_s4] sm:$0xff] }
 0x18e   :  { %1774 = vmatmul.bf16.vlgmr.msrb.gmra.mxu0 %v3432_v18  ;;  %v993_v21 = vadd.f32 %v992_v12, %v980_v14  ;;  %v3208_v12 = vld [vmem:[#allocation4 + $0x2b4] sm:$0xf]  ;;  %v1115_v8 = vperm.slane %v3474_v7, 1 }
 0x18f   :  { %1818 = vmatpush.bf16.xpose.msra.mxu0 %v2933_v60  ;;  %v2921_v60 = vor.u32 %v3212_v56, %v2918_v57  ;;  %v2905_v19 = vor.u32 %v3208_v12, %v2902_v15  ;;  %v2974_v56 = vld [vmem:[#allocation4 + $0x348] sm:$0xf0] }
 0x190   :  { %1800 = vmatmul.bf16.vlgmr.msrb.gmra.mxu2 %v3432_v18  ;;  %v997_v28 = vmax.f32 %v993_v21, 0.0  ;;  %v2830_v21 = vld [vmem:[#allocation4 + $0x228] sm:$0xf0]  ;;  %v2977_v57 = vor.u32 %v3226_v55, %v2974_v56 }
 0x191   :  { %1844 = vmatpush.bf16.xpose.msra.mxu2 %v2997_v36  ;;  %v2884_v36 = vld [vmem:[#allocation4 + $0x290] sm:$0xf]  ;;  %v2833_v26 = vor.u32 %v3190_v20, %v2830_v21  ;;  %v1117_v21 = vperm.slane %v3474_v7, 3 }
 0x192   :  { %v3455_v17 = vpack.c.bf16 %v997_v28, %v997_v28  ;;  %v2885_v58 = vor.u32 %v3205_v37, %v2884_v36  ;;  %v2822_v28 = vld [vmem:[#allocation4 + $0x218] sm:$0xf0]  ;;  %v3222_v36 = vld [vmem:[#allocation4 + $0x324] sm:$0xf]  ;;  %v2958_v37 = vld [vmem:[#allocation4 + $0x328] sm:$0xf0] }
 0x193   :  { %v981_v30 = vpop.f32.mrf.mxu0 }
 0x194   :  { %v994_v23 = vpop.f32.mrf.mxu1  ;;  %1709 = vmatmul.bf16.vlgmr.msrb.gmra.mxu3 %v3455_v17  ;;  %1735 = vmatmul.bf16.vlgmr.msra.gmra.mxu1 %v3455_v17 }
 0x195   :  { %1805 = vmatpush.bf16.xpose.msrb.mxu3 %v2873_v29  ;;  %1831 = vmatpush.bf16.xpose.msra.mxu1 %v2937_v13  ;;  %v3204_v29 = vld [vmem:[#allocation4 + $0x294] sm:$0xf]  ;;  %v2886_v13 = vld [vmem:[#allocation4 + $0x298] sm:$0xf0] }
 0x196   :  { %v2889_v23 = vor.u32 %v3204_v29, %v2886_v13 }
 0x197   :  { %1819 = vmatpush.bf16.xpose.msra.mxu0 %v2925_v2  ;;  %v2910_v2 = vld [vmem:[#allocation4 + $0x2c8] sm:$0xf0] }
 0x198   :  { %v2913_v6 = vor.u32 %v3210_v1, %v2910_v2  ;;  %v3218_v1 = vld [vmem:[#allocation4 + $0x304] sm:$0xf]  ;;  %v2942_v2 = vld [vmem:[#allocation4 + $0x308] sm:$0xf0] }
 0x199   :  { %1845 = vmatpush.bf16.xpose.msra.mxu2 %v2989_v5  ;;  %v2949_v5 = vor.u32 %v3221_v62, %v2948_v61  ;;  %v2961_v61 = vor.u32 %v3222_v36, %v2958_v37  ;;  %v3220_v62 = vld [vmem:[#allocation4 + $0x314] sm:$0xf] }
 0x19d   :  { %1806 = vmatpush.bf16.xpose.msrb.mxu3 %v2865_v45  ;;  %1832 = vmatpush.bf16.xpose.msra.mxu1 %v2929_v46  ;;  %v3461_v25 = vpop.f32.mrf.mxu2  ;;  %v3230_v46 = vld [vmem:[#allocation4 + $0x364] sm:$0xf] }
 0x19e   :  { %v2993_v32 = vor.u32 %v3230_v46, %v2990_v47 }
 0x19f   :  { %1820 = vmatpush.bf16.xpose.msra.mxu0 %v2917_v10  ;;  %v3219_v10 = vld [vmem:[#allocation4 + $0x304] sm:$0xf0] }
 0x1a0   :  { %v2941_v16 = vor.u32 %v3219_v10, %v2940_v9 }
 0x1a1   :  { %1846 = vmatpush.bf16.xpose.msra.mxu2 %v2981_v3  ;;  %v3192_v3 = vld [vmem:[#allocation4 + $0x234] sm:$0xf] }
 0x1a2   :  { %v2841_v52 = vor.u32 %v3192_v3, %v2838_v11 }
 0x1a4   :  { %1761 = vmatmul.bf16.vlgmr.msra.gmra.mxu3 %v3455_v17  ;;  %1787 = vmatmul.bf16.vlgmr.msrb.gmra.mxu1 %v3455_v17 }
 0x1a5   :  { %1807 = vmatpush.bf16.xpose.msrb.mxu3 %v2857_v59  ;;  %1833 = vmatpush.bf16.xpose.msra.mxu1 %v2921_v60  ;;  %v1699_v14 = vpop.f32.mrf.mxu2  ;;  %v2966_v59 = vld [vmem:[#allocation4 + $0x338] sm:$0xf0] }
 0x1a7   :  { %1821 = vmatpush.bf16.xpose.msra.mxu0 %v2909_v22  ;;  %v3206_v22 = vld [vmem:[#allocation4 + $0x2a4] sm:$0xf] }
 0x1a8   :  { %v2897_v27 = vor.u32 %v3206_v22, %v2894_v24 }
 0x1a9   :  { %1847 = vmatpush.bf16.xpose.msra.mxu2 %v2973_v4  ;;  %v3188_v4 = vld [vmem:[#allocation4 + $0x214] sm:$0xf] }
 0x1aa   :  { %v2825_v30 = vor.u32 %v3188_v4, %v2822_v28  ;;  %v1116_v4 = vperm.slane %v3474_v7, 2 }
 0x1ad   :  { %1808 = vmatpush.bf16.xpose.msrb.mxu3 %v2849_v38  ;;  %1834 = vmatpush.bf16.xpose.msra.mxu1 %v2913_v6 }
 0x1af   :  { %1822 = vmatpush.bf16.xpose.msra.mxu0 %v2901_v40  ;;  %v3232_v40 = vld [vmem:[#allocation4 + $0x374] sm:$0xf] }
 0x1b1   :  { %1848 = vmatpush.bf16.xpose.msra.mxu2 %v2965_v44 }
 0x1b5   :  { %1809 = vmatpush.bf16.xpose.msrb.mxu3 %v2841_v52  ;;  %1835 = vmatpush.bf16.xpose.msra.mxu1 %v2905_v19 }
 0x1b7   :  { %1823 = vmatpush.bf16.xpose.msra.mxu0 %v2893_v54  ;;  %v2985_v54 = vor.u32 %v3228_v51, %v2982_v53 }
 0x1b9   :  { %1849 = vmatpush.bf16.xpose.msra.mxu2 %v2957_v49  ;;  %v3224_v49 = vld [vmem:[#allocation4 + $0x334] sm:$0xf] }
 0x1ba   :  { %v2969_v60 = vor.u32 %v3224_v49, %v2966_v59 }
 0x1bd   :  { %1810 = vmatpush.bf16.xpose.msrb.mxu3 %v2833_v26  ;;  %1836 = vmatpush.bf16.xpose.msra.mxu1 %v2897_v27 }
 0x1bf   :  { %1824 = vmatpush.bf16.xpose.msra.mxu0 %v2885_v58  ;;  %v2953_v58 = vor.u32 %v3220_v62, %v2950_v63 }
 0x1c1   :  { %1850 = vmatpush.bf16.xpose.msra.mxu2 %v2949_v5  ;;  %v2945_v5 = vor.u32 %v3218_v1, %v2942_v2 }
 0x1c5   :  { %1811 = vmatpush.bf16.xpose.msrb.mxu3 %v2825_v30  ;;  %1837 = vmatpush.bf16.xpose.msra.mxu1 %v2889_v23 }
 0x1c7   :  { %1825 = vmatpush.bf16.xpose.msra.mxu0 %v2877_v50  ;;  %v1114_v50 = vperm.slane %v3474_v7, 0 }
 0x1c9   :  { %1851 = vmatpush.bf16.xpose.msra.mxu2 %v2941_v16  ;;  %v1698_v15 = vadd.f32 %v3461_v25, %v1114_v50 }
 0x1cb   :  { %v1723_v31 = vpop.f32.mrf.mxu0 }
 0x1cc   :  { %v1724_v10 = vadd.f32 %v1723_v31, %v1115_v8 }
 0x1cd   :  { %1812 = vmatpush.bf16.xpose.msrb.mxu3 %v2817_v42  ;;  %1838 = vmatpush.bf16.xpose.msra.mxu1 %v2881_v43 }
 0x1ce   :  { %1826 = vmatmul.bf16.vlgmr.msra.gmra.mxu0 %v3432_v18 }
 0x1d0   :  { %1852 = vmatmul.bf16.vlgmr.msra.gmra.mxu2 %v3432_v18  ;;  %v3001_v18 = vor.u32 %v3232_v40, %v2998_v41 }
 0x1d3   :  { %v3465_v44 = vpop.f32.mrf.mxu2  ;;  %v1725_v45 = vpop.f32.mrf.mxu0 }
 0x1d4   :  { %1813 = vmatmul.bf16.vlgmr.msrb.gmra.mxu3 %v3455_v17  ;;  %1839 = vmatmul.bf16.vlgmr.msra.gmra.mxu1 %v3455_v17  ;;  %v1750_v30 = vadd.f32 %v3465_v44, %v1116_v4 }
 0x1d5   :  { %1857 = vmatpush.bf16.xpose.msra.mxu3 %v3001_v18 }
 0x1db   :  { %v1751_v48 = vpop.f32.mrf.mxu2 }
 0x1dd   :  { %1858 = vmatpush.bf16.xpose.msra.mxu3 %v2993_v32 }
 0x1e5   :  { %1859 = vmatpush.bf16.xpose.msra.mxu3 %v2985_v54 }
 0x1ed   :  { %1860 = vmatpush.bf16.xpose.msra.mxu3 %v2977_v57 }
 0x1f5   :  { %1861 = vmatpush.bf16.xpose.msra.mxu3 %v2969_v60 }
 0x1fd   :  { %1862 = vmatpush.bf16.xpose.msra.mxu3 %v2961_v61 }
 0x205   :  { %1863 = vmatpush.bf16.xpose.msra.mxu3 %v2953_v58 }
 0x20b   :  { %v1775_v0 = vpop.f32.mrf.mxu0 }
 0x20c   :  { %v1776_v24 = vadd.f32 %v1775_v0, %v1117_v21 }
 0x20d   :  { %1864 = vmatpush.bf16.xpose.msra.mxu3 %v2945_v5 }
 0x211   :  { %v1736_v3 = vpop.f32.mrf.mxu1 }
 0x212   :  { %v1737_v11 = vadd.f32 %v1736_v3, %v1724_v10 }
 0x213   :  { %v3469_v38 = vpop.f32.mrf.mxu2  ;;  %v1777_v6 = vpop.f32.mrf.mxu0 }
 0x214   :  { %1865 = vmatmul.bf16.vlgmr.msra.gmra.mxu3 %v3455_v17  ;;  %v3003_v12 = vmul.f32 -1.442695, %v1737_v11 }
 0x216   :  { %3240 = vpow2.f32 %v3003_v12 }
 0x217   :  { %v1710_v16 = vpop.f32.mrf.mxu3 }
 0x218   :  { %v1711_v14 = vadd.f32 %v1710_v16, %v1698_v15 }
 0x219   :  { %v1738_v52 = vpop.f32.mrf.mxu1 }
 0x21a   :  { %v3002_v19 = vmul.f32 -1.442695, %v1711_v14 }
 0x21b   :  { %v1803_v9 = vpop.f32.mrf.mxu2 }
 0x21c   :  { %v3241_v20 = vpop.eup %3240  ;;  %3242 = vpow2.f32 %v3002_v19 }
 0x21d   :  { %v1892_v22 = vadd.f32 1.0, %v3241_v20 }
 0x21f   :  { %3244 = vrcp.f32 %v1892_v22  ;;  %v1712_v17 = vpop.f32.mrf.mxu3  ;;  %vm1918_vm1 = vweird.f32 %v1892_v22  ;;  %v1924_v42 = vand.u32 2147483648, %v1892_v22  ;;  %v1922_v45 = vand.u32 2147483647, %v1892_v22 }
 0x221   :  { %v1788_v26 = vpop.f32.mrf.mxu1  ;;  %v1925_v48 = vor.u32 1.1754944e-38, %v1924_v42  ;;  %vm1923_vm3 = vcmp.eq.f32.partialorder %v1922_v45, 8.507059e+37 }
 0x222   :  { %v3243_v27 = vpop.eup %3242  ;;  %v1789_v28 = vadd.f32 %v1788_v26, %v1776_v24 }
 0x223   :  { %v1891_v29 = vadd.f32 1.0, %v3243_v27 }
 0x224   :  { %v3005_v25 = vmul.f32 -1.442695, %v1789_v28 }
 0x225   :  { %v3245_v13 = vpop.eup %3244  ;;  %3246 = vrcp.f32 %v1891_v29  ;;  %v1909_v51 = vand.u32 2147483648, %v1891_v29  ;;  %v1907_v55 = vand.u32 2147483647, %v1891_v29  ;;  %vm1903_vm5 = vweird.f32 %v1891_v29 }
 0x226   :  { %v1914_v23 = vmul.f32 %v3245_v13, %v1892_v22  ;;  %3248 = vpow2.f32 %v3005_v25  ;;  %vm1919_vm0 = vweird.f32 %v3245_v13 }
 0x227   :  { %v1762_v31 = vpop.f32.mrf.mxu3  ;;  %vm1920_vm2 = vmor %vm1918_vm1, %vm1919_vm0  ;;  %v1910_v59 = vor.u32 1.1754944e-38, %v1909_v51  ;;  %vm1908_vm9 = vcmp.eq.f32.partialorder %v1907_v55, 8.507059e+37 }
 0x228   :  { %v1915_v33 = vsub.f32 1.0, %v1914_v23  ;;  %v1763_v34 = vadd.f32 %v1762_v31, %v1750_v30  ;;  %v1118_v30 = vperm.slane %v3474_v7, 4 }
 0x229   :  { %v1790_v35 = vpop.f32.mrf.mxu1 }
 0x22a   :  { %v1916_v39 = vmul.f32 %v3245_v13, %v1915_v33  ;;  %v3004_v40 = vmul.f32 -1.442695, %v1763_v34  ;;  %v1802_v33 = vadd.f32 %v3469_v38, %v1118_v30 }
 0x22b   :  { %v3247_v41 = vpop.eup %3246 }
 0x22c   :  { %v3249_v43 = vpop.eup %3248  ;;  %v1917_v18 = vadd.f32 %v3245_v13, %v1916_v39  ;;  %v1899_v46 = vmul.f32 %v3247_v41, %v1891_v29  ;;  %3250 = vpow2.f32 %v3004_v40  ;;  %vm1904_vm4 = vweird.f32 %v3247_v41 }
 0x22d   :  { %v1894_v47 = vadd.f32 1.0, %v3249_v43  ;;  %vm1905_vm8 = vmor %vm1903_vm5, %vm1904_vm4  ;;  %v1119_v29 = vperm.slane %v3474_v7, 5 }
 0x22e   :  { %v1921_v44 = vsel %vm1920_vm2, %v3245_v13, %v1917_v18  ;;  %v1900_v32 = vsub.f32 1.0, %v1899_v46  ;;  %vm2019_vm2 = vcmask 1043456  }
 0x22f   :  { %3252 = vrcp.f32 %v1894_v47  ;;  %v1764_v53 = vpop.f32.mrf.mxu3  ;;  %v1926_v56 = vsel %vm1923_vm3, %v1925_v48, %v1921_v44  ;;  %v1954_v9 = vand.u32 2147483648, %v1894_v47  ;;  %vm1948_vm11 = vweird.f32 %v1894_v47 }
 0x230   :  { %v1901_v54 = vmul.f32 %v3247_v41, %v1900_v32  ;;  %v2010_v36 = vrot.slane %v1926_v56, 6  ;;  %v1952_v3 = vand.u32 2147483647, %v1894_v47 }
 0x231   :  { %v1955_v52 = vor.u32 1.1754944e-38, %v1954_v9 }
 0x232   :  { %v3251_v57 = vpop.eup %3250  ;;  %v1902_v49 = vadd.f32 %v3247_v41, %v1901_v54  ;;  %vm1953_vm14 = vcmp.eq.f32.partialorder %v1952_v3, 8.507059e+37 }
 0x233   :  { %v1893_v60 = vadd.f32 1.0, %v3251_v57 }
 0x234   :  { %v1906_v37 = vsel %vm1905_vm8, %v3247_v41, %v1902_v49 }
 0x235   :  { %v3253_v61 = vpop.eup %3252  ;;  %v1911_v62 = vsel %vm1908_vm9, %v1910_v59, %v1906_v37  ;;  %3254 = vrcp.f32 %v1893_v60  ;;  %v1939_v12 = vand.u32 2147483648, %v1893_v60  ;;  %v1937_v14 = vand.u32 2147483647, %v1893_v60 }
 0x236   :  { %v2016_v63 = vsel %vm2015_vm6, %v1911_v62, %v2010_v36  ;;  %v1944_v0 = vmul.f32 %v3253_v61, %v1894_v47  ;;  %vm1949_vm10 = vweird.f32 %v3253_v61  ;;  %vm1933_vm15 = vweird.f32 %v1893_v60 }
 0x237   :  { %vm1950_vm12 = vmor %vm1948_vm11, %vm1949_vm10  ;;  %v1940_v21 = vor.u32 1.1754944e-38, %v1939_v12  ;;  %vm1938_vm1 = vcmp.eq.f32.partialorder %v1937_v14, 8.507059e+37 }
 0x238   :  { %v1945_v1 = vsub.f32 1.0, %v1944_v0 }
 0x23a   :  { %v1946_v5 = vmul.f32 %v3253_v61, %v1945_v1  ;;  %v1120_v1 = vperm.slane %v3474_v7, 6 }
 0x23b   :  { %v3255_v2 = vpop.eup %3254 }
 0x23c   :  { %v1929_v6 = vmul.f32 %v3255_v2, %v1893_v60  ;;  %v1947_v8 = vadd.f32 %v3253_v61, %v1946_v5  ;;  %vm1934_vm13 = vweird.f32 %v3255_v2 }
 0x23d   :  { %vm1935_vm0 = vmor %vm1933_vm15, %vm1934_vm13 }
 0x23e   :  { %v1930_v50 = vsub.f32 1.0, %v1929_v6  ;;  %v1951_v15 = vsel %vm1950_vm12, %v3253_v61, %v1947_v8 }
 0x23f   :  { %v1956_v20 = vsel %vm1953_vm14, %v1955_v52, %v1951_v15 }
 0x240   :  { %v1931_v16 = vmul.f32 %v3255_v2, %v1930_v50  ;;  %v2012_v26 = vrot.slane %v1956_v20, 2 }
 0x242   :  { %v1932_v19 = vadd.f32 %v3255_v2, %v1931_v16 }
 0x244   :  { %v1936_v22 = vsel %vm1935_vm0, %v3255_v2, %v1932_v19 }
 0x245   :  { %v1941_v17 = vsel %vm1938_vm1, %v1940_v21, %v1936_v22 }
 0x246   :  { %v2011_v27 = vrot.slane %v1941_v17, 4 }
 0x248   :  { %v2018_v4 = vsel %vm2017_vm7, %v2011_v27, %v2012_v26 }
 0x249   :  { %v2020_v28 = vsel %vm2019_vm2, %v2016_v63, %v2018_v4 }
 0x24a   :  { %2080 = vst [vmem:[%s3506_s5] sm:$0xff] %v2020_v28 }
 0x24b   :  { %v1827_v58 = vpop.f32.mrf.mxu0 }
 0x24c   :  { %v1828_v25 = vadd.f32 %v1827_v58, %v1119_v29 }
 0x251   :  { %v1840_v13 = vpop.f32.mrf.mxu1 }
 0x252   :  { %v1841_v23 = vadd.f32 %v1840_v13, %v1828_v25 }
 0x253   :  { %v3484_v10 = vpop.f32.mrf.mxu2  ;;  %v1829_v11 = vpop.f32.mrf.mxu0 }
 0x254   :  { %v3007_v31 = vmul.f32 -1.442695, %v1841_v23  ;;  %v1854_v2 = vadd.f32 %v3484_v10, %v1120_v1 }
 0x256   :  { %3256 = vpow2.f32 %v3007_v31 }
 0x257   :  { %v1814_v34 = vpop.f32.mrf.mxu3 }
 0x258   :  { %v1815_v35 = vadd.f32 %v1814_v34, %v1802_v33 }
 0x259   :  { %v1842_v39 = vpop.f32.mrf.mxu1 }
 0x25a   :  { %v3006_v40 = vmul.f32 -1.442695, %v1815_v35 }
 0x25b   :  { %v1855_v24 = vpop.f32.mrf.mxu2 }
 0x25c   :  { %v3257_v41 = vpop.eup %3256  ;;  %3258 = vpow2.f32 %v3006_v40 }
 0x25d   :  { %v1896_v42 = vadd.f32 1.0, %v3257_v41 }
 0x25f   :  { %3260 = vrcp.f32 %v1896_v42  ;;  %v1816_v43 = vpop.f32.mrf.mxu3  ;;  %v1984_v38 = vand.u32 2147483648, %v1896_v42  ;;  %vm1978_vm4 = vweird.f32 %v1896_v42  ;;  %v1982_v53 = vand.u32 2147483647, %v1896_v42 }
 0x261   :  { %v1985_v57 = vor.u32 1.1754944e-38, %v1984_v38  ;;  %vm1983_vm7 = vcmp.eq.f32.partialorder %v1982_v53, 8.507059e+37 }
 0x262   :  { %v3259_v18 = vpop.eup %3258 }
 0x263   :  { %v1895_v45 = vadd.f32 1.0, %v3259_v18 }
 0x265   :  { %v3261_v46 = vpop.eup %3260  ;;  %3262 = vrcp.f32 %v1895_v45  ;;  %v1969_v49 = vand.u32 2147483648, %v1895_v45  ;;  %v1967_v60 = vand.u32 2147483647, %v1895_v45  ;;  %vm1963_vm9 = vweird.f32 %v1895_v45 }
 0x266   :  { %v1974_v47 = vmul.f32 %v3261_v46, %v1896_v42  ;;  %vm1979_vm3 = vweird.f32 %v3261_v46 }
 0x267   :  { %vm1980_vm5 = vmor %vm1978_vm4, %vm1979_vm3  ;;  %v1970_v61 = vor.u32 1.1754944e-38, %v1969_v49  ;;  %vm1968_vm11 = vcmp.eq.f32.partialorder %v1967_v60, 8.507059e+37 }
 0x268   :  { %v1975_v44 = vsub.f32 1.0, %v1974_v47 }
 0x26a   :  { %v1976_v32 = vmul.f32 %v3261_v46, %v1975_v44 }
 0x26b   :  { %v3263_v48 = vpop.eup %3262 }
 0x26c   :  { %v1977_v51 = vadd.f32 %v3261_v46, %v1976_v32  ;;  %v1959_v54 = vmul.f32 %v3263_v48, %v1895_v45  ;;  %vm1964_vm8 = vweird.f32 %v3263_v48 }
 0x26d   :  { %vm1965_vm10 = vmor %vm1963_vm9, %vm1964_vm8 }
 0x26e   :  { %v1981_v55 = vsel %vm1980_vm5, %v3261_v46, %v1977_v51  ;;  %v1960_v56 = vsub.f32 1.0, %v1959_v54 }
 0x26f   :  { %v1986_v36 = vsel %vm1983_vm7, %v1985_v57, %v1981_v55 }
 0x270   :  { %v1961_v59 = vmul.f32 %v3263_v48, %v1960_v56  ;;  %v2013_v62 = vrot.slane %v1986_v36, 6 }
 0x272   :  { %v1962_v37 = vadd.f32 %v3263_v48, %v1961_v59 }
 0x274   :  { %v1966_v63 = vsel %vm1965_vm10, %v3263_v48, %v1962_v37 }
 0x275   :  { %v1971_v58 = vsel %vm1968_vm11, %v1970_v61, %v1966_v63 }
 0x276   :  { %v2021_v0 = vsel %vm2015_vm6, %v1971_v58, %v2013_v62 }
 0x297   :  { %v1866_v5 = vpop.f32.mrf.mxu3 }
 0x298   :  { %v1867_v6 = vadd.f32 %v1866_v5, %v1854_v2 }
 0x29a   :  { %v3008_v8 = vmul.f32 -1.442695, %v1867_v6 }
 0x29c   :  { %3264 = vpow2.f32 %v3008_v8 }
 0x29f   :  { %v1868_v9 = vpop.f32.mrf.mxu3 }
 0x2a2   :  { %v3265_v3 = vpop.eup %3264 }
 0x2a3   :  { %v1897_v50 = vadd.f32 1.0, %v3265_v3 }
 0x2a5   :  { %3266 = vrcp.f32 %v1897_v50  ;;  %v1999_v16 = vand.u32 2147483648, %v1897_v50  ;;  %v1997_v52 = vand.u32 2147483647, %v1897_v50  ;;  %vm1993_vm6 = vweird.f32 %v1897_v50 }
 0x2a7   :  { %v2000_v7 = vor.u32 1.1754944e-38, %v1999_v16  ;;  %vm1998_vm14 = vcmp.eq.f32.partialorder %v1997_v52, 8.507059e+37 }
 0x2ab   :  { %v3267_v11 = vpop.eup %3266 }
 0x2ac   :  { %v1989_v12 = vmul.f32 %v3267_v11, %v1897_v50  ;;  %vm1994_vm12 = vweird.f32 %v3267_v11 }
 0x2ad   :  { %vm1995_vm13 = vmor %vm1993_vm6, %vm1994_vm12 }
 0x2ae   :  { %v1990_v15 = vsub.f32 1.0, %v1989_v12 }
 0x2b0   :  { %v1991_v14 = vmul.f32 %v3267_v11, %v1990_v15 }
 0x2b2   :  { %v1992_v19 = vadd.f32 %v3267_v11, %v1991_v14 }
 0x2b4   :  { %v1996_v10 = vsel %vm1995_vm13, %v3267_v11, %v1992_v19 }
 0x2b5   :  { %v2001_v20 = vsel %vm1998_vm14, %v2000_v7, %v1996_v10 }
 0x2b6   :  { %v2014_v21 = vrot.slane %v2001_v20, 4 }
 0x2b8   :  { %v2022_v22 = vsel %vm2019_vm2, %v2021_v0, %v2014_v21 }
 0x2b9   :  { %2056 = vst [vmem:[#allocation6 + $0x8] sm:$0x3f] %v2022_v22 }
 0x2c0   :  { %v2091_v17 = vld [vmem:[#allocation6 + $0x8] sm:$0x3f] }
 0x2c1   :  { %3009 = vst [vmem:[%s3506_s5 + $0x8] sm:$0x3f] %v2091_v17 }
 0x2c2   :  { %2096 = vsyncpa [#allocation3], 1 }
 0x2c3   :  { %2097 = vsyncpa [#allocation5], 1 }

</bundles_post_ra>
